<compile_context>
chip_gen: v5e
topology: v5e:2x2
jax: 0.10.0
libtpu: 0.0.40
codegen_flags: <defaults>
</compile_context>

<pallas_src>
import jax
import jax.numpy as jnp
from jax import lax
from jax.experimental import pallas as pl
from jax.experimental.pallas import tpu as pltpu


# ----------------------------------------------------------------------------
# Generation-aware VMEM budgeting / tile picking
# ----------------------------------------------------------------------------

def _vmem_limit_bytes():
    """~75% of physical VMEM, capped at 96 MiB (v5e/v6e) / 48 MiB (v7x)."""
    try:
        cap = int(pltpu.get_tpu_info().vmem_capacity_bytes)
    except Exception:
        cap = 64 * 1024 * 1024          # conservative fallback (v7x-sized)
    return max(32 * 1024 * 1024, min(cap * 3 // 4, 96 * 1024 * 1024))


def _padded_vmem_bytes(shape, itemsize):
    """Approximate VMEM footprint with (sublane, 128-lane) tiling padding."""
    shape = tuple(int(d) for d in shape)
    if len(shape) < 2:
        shape = (1,) + shape
    lead = 1
    for d in shape[:-2]:
        lead *= d
    sub_pad = 8 * max(1, 4 // itemsize)          # 8 for f32, 16 for bf16
    sub = -(-shape[-2] // sub_pad) * sub_pad
    lane = -(-shape[-1] // 128) * 128
    return lead * sub * lane * itemsize


def _weights_vmem_bytes(arrays):
    return sum(_padded_vmem_bytes(a.shape, a.dtype.itemsize) for a in arrays)


def _pick_row_tile(H, footprint, budget, other_parallel, row_width,
                   target_steps=8):
    """Largest divisor of H that fits `budget`, preferring row-aligned tiles
    (th*row_width % 8 == 0) and enough grid steps for pipelining/megacore."""
    divs = [d for d in range(1, H + 1) if H % d == 0]
    fits = [d for d in divs if footprint(d) <= budget] or [1]
    aligned = [d for d in fits if (d * row_width) % 8 == 0] or fits
    enough = [d for d in aligned if other_parallel * (H // d) >= target_steps]
    return max(enough or aligned)


# ----------------------------------------------------------------------------
# Kernel 1: fused ConvTranspose2d(k=2, s=2) + AttentionGate
# ----------------------------------------------------------------------------
# Fine NHWC tensors (B, 2H, 2W, C) are viewed as (B, H, 2, W, 2*C) with axes
# (b, i, dh, j, dw*C + c) -- a free, layout-preserving reshape.  Both dh
# up-projections run as one (M,Cin)x(Cin,4*Ch) bf16 MXU call; the gate runs
# per (dh, dw) with the original (Ch,Fi)/(Cl,Fi) weights (no block-diag zeros);
# psi is a VPU/XLU lane reduction; sigmoid uses the EUP exp.

def _make_fused_up_gate_kernel(th, W, Cin, Ch, Cl):
    M = th * W

    def kernel(g_ref, x_ref, wup_ref, bup_ref, wg_ref, wx_ref, bgx_ref,
               wpsi_ref, bpsi_ref, gup_ref, xatt_ref):
        g_rows = g_ref[0].reshape(M, Cin)                    # bf16 (M, Cin)
        # Merged dh up-projection: columns ordered (dh, dw, c).
        gup_all = (jnp.dot(g_rows, wup_ref[...],
                           preferred_element_type=jnp.float32)
                   + bup_ref[...])                           # f32 (M, 4*Ch)
        xv = x_ref[0]                                        # bf16 (th, 2, W, 2*Cl)
        wg = wg_ref[...]                                     # bf16 (Ch, Fi)
        wx = wx_ref[...]                                     # bf16 (Cl, Fi)
        bgx = bgx_ref[...]                                   # f32  (1, Fi)
        wpsi = wpsi_ref[...]                                 # f32  (1, Fi)
        bp = bpsi_ref[0]                                     # scalar (SMEM)
        lane = lax.broadcasted_iota(jnp.int32, (1, 2 * Cl), 1)

        for dh in range(2):                                  # unrolled
            gup_bf = gup_all[:, dh * 2 * Ch:(dh + 1) * 2 * Ch].astype(jnp.bfloat16)
            gup_ref[0, :, dh, :, :] = gup_bf.reshape(th, W, 2 * Ch)

            xf = xv[:, dh, :, :].reshape(M, 2 * Cl)          # bf16, cols (dw, c)
            att = []
            for dw in range(2):                              # per sub-pixel gate
                gs = gup_bf[:, dw * Ch:(dw + 1) * Ch]
                xs = xf[:, dw * Cl:(dw + 1) * Cl]
                h = jnp.maximum(
                    jnp.dot(gs, wg, preferred_element_type=jnp.float32)
                    + jnp.dot(xs, wx, preferred_element_type=jnp.float32)
                    + bgx, 0.0)                              # f32 (M, Fi)
                psi = jnp.sum(h * wpsi, axis=-1, keepdims=True) + bp
                att.append(1.0 / (1.0 + jnp.exp(-psi)))      # exact sigmoid
            attn = jnp.where(lane < Cl, att[0], att[1])      # f32 (M, 2*Cl)
            xatt_ref[0, :, dh, :, :] = (
                xf.astype(jnp.float32) * attn
            ).astype(jnp.bfloat16).reshape(th, W, 2 * Cl)

    return kernel


def fused_upsample_attention_gate(g, x5, wup, bup, wg, wx, bgx, wpsi, bpsi,
                                  vmem_limit):
    """g:(B,H,W,Cin) bf16 coarse, x5:(B,H,2,W,2*Cl) bf16 skip (fine view).

    Returns (g_up:(B,2H,2W,Ch), x_attn:(B,2H,2W,Cl)) in bf16, one HBM pass each."""
    B, H, W, Cin = g.shape
    Ch = wup.shape[-1] // 4
    Cl = x5.shape[-1] // 2

    budget = vmem_limit - _weights_vmem_bytes(
        (wup, bup, wg, wx, bgx, wpsi)) - (2 << 20)

    def footprint(th):                                       # double-buffered I/O
        return 2 * (_padded_vmem_bytes((th, W, Cin), 2)
                    + 2 * _padded_vmem_bytes((th, 2, W, 2 * Cl), 2)
                    + _padded_vmem_bytes((th, 2, W, 2 * Ch), 2))

    th = _pick_row_tile(H, footprint, budget, other_parallel=B, row_width=W)
    kernel = _make_fused_up_gate_kernel(th, W, Cin, Ch, Cl)

    gup5, xatt5 = pl.pallas_call(
        kernel,
        out_shape=(jax.ShapeDtypeStruct((B, H, 2, W, 2 * Ch), jnp.bfloat16),
                   jax.ShapeDtypeStruct((B, H, 2, W, 2 * Cl), jnp.bfloat16)),
        grid=(B, H // th),
        in_specs=[
            pl.BlockSpec((1, th, W, Cin), lambda b, r: (b, r, 0, 0)),
            pl.BlockSpec((1, th, 2, W, 2 * Cl), lambda b, r: (b, r, 0, 0, 0)),
            pl.BlockSpec(wup.shape, lambda b, r: (0, 0)),
            pl.BlockSpec(bup.shape, lambda b, r: (0, 0)),
            pl.BlockSpec(wg.shape, lambda b, r: (0, 0)),
            pl.BlockSpec(wx.shape, lambda b, r: (0, 0)),
            pl.BlockSpec(bgx.shape, lambda b, r: (0, 0)),
            pl.BlockSpec(wpsi.shape, lambda b, r: (0, 0)),
            pl.BlockSpec(memory_space=pltpu.MemorySpace.SMEM),   # scalar psi bias
        ],
        out_specs=(
            pl.BlockSpec((1, th, 2, W, 2 * Ch), lambda b, r: (b, r, 0, 0, 0)),
            pl.BlockSpec((1, th, 2, W, 2 * Cl), lambda b, r: (b, r, 0, 0, 0)),
        ),
        compiler_params=pltpu.CompilerParams(
            dimension_semantics=("parallel", "parallel"),
            vmem_limit_bytes=vmem_limit),
    )(g, x5, wup, bup, wg, wx, bgx, wpsi, bpsi)

    return (gup5.reshape(B, 2 * H, 2 * W, Ch),
            xatt5.reshape(B, 2 * H, 2 * W, Cl))


# ----------------------------------------------------------------------------
# Kernel 2: row-tiled 3x3 SAME conv (+folded BN) + ReLU over channel groups
# ----------------------------------------------------------------------------

def _make_conv3x3_kernel(th, Hf, Wf, c_list, Cout, in_dtype, out_dtype):
    n_in = len(c_list)
    Mrows = th * Wf

    def kernel(*refs):
        x_hbm = refs[:n_in]
        w_refs = refs[n_in:2 * n_in]
        b_ref = refs[2 * n_in]
        o_ref = refs[2 * n_in + 1]
        bufs = refs[2 * n_in + 2:2 * n_in + 2 + n_in]
        sem = refs[2 * n_in + 2 + n_in]
        acc_ref = refs[2 * n_in + 3 + n_in]

        b = pl.program_id(0)
        r = pl.program_id(1)
        nrt = pl.num_programs(1)
        row0 = r * th
        row_top = jnp.maximum(row0 - 1, 0)          # clamped; zeroed if OOB
        row_bot = jnp.minimum(row0 + th, Hf - 1)

        # --- overlap all (th + 2)-row input DMAs (interior + 2 halo rows) ---
        copies = []
        for gi, (buf, xh) in enumerate(zip(bufs, x_hbm)):
            for si, (src_r, dst_r, nrows) in enumerate(
                    ((row0, 1, th), (row_top, 0, 1), (row_bot, th + 1, 1))):
                cp = pltpu.make_async_copy(
                    xh.at[b, pl.ds(src_r, nrows), :, :],
                    buf.at[pl.ds(dst_r, nrows), pl.ds(1, Wf), :],
                    sem.at[gi, si])
                cp.start()
                copies.append(cp)
        for cp in copies:
            cp.wait()

        # --- zero ONLY the 1-wide halo strips (no full-pad zero / copy) ---
        for buf, c in zip(bufs, c_list):
            buf[:, pl.ds(0, 1), :] = jnp.zeros((th + 2, 1, c), in_dtype)
            buf[:, pl.ds(Wf + 1, 1), :] = jnp.zeros((th + 2, 1, c), in_dtype)

            @pl.when(r == 0)
            def _(buf=buf, c=c):
                buf[pl.ds(0, 1), pl.ds(1, Wf), :] = jnp.zeros((1, Wf, c), in_dtype)

            @pl.when(r == nrt - 1)
            def _(buf=buf, c=c):
                buf[pl.ds(th + 1, 1), pl.ds(1, Wf), :] = jnp.zeros(
                    (1, Wf, c), in_dtype)

        # --- 9 shifted-tap matmuls; W-shift hoisted (one slice per dw/group),
        #     channel groups accumulate so torch.cat never materializes. ------
        acc_ref[...] = jnp.zeros((Mrows, Cout), jnp.float32)
        for dw in range(3):
            part = None
            for buf, w_ref, c in zip(bufs, w_refs, c_list):
                shifted = buf[:, pl.ds(dw, Wf), :]           # (th+2, Wf, c) bf16
                for dh in range(3):
                    patch = shifted[dh:dh + th].reshape(Mrows, c)
                    d = jnp.dot(patch, w_ref[3 * dh + dw],
                                preferred_element_type=jnp.float32)
                    part = d if part is None else part + d
            acc_ref[...] += part                              # explicit VMEM acc

        o_ref[0] = jnp.maximum(acc_ref[...] + b_ref[...], 0.0
                               ).reshape(th, Wf, Cout).astype(out_dtype)

    return kernel


def conv3x3_bn_relu(inputs, weights, bias, out_dtype, vmem_limit):
    """SAME 3x3 conv + ReLU; BN scale pre-folded into `weights` (bf16).

    inputs : list of NHWC bf16 tensors (same B,Hf,Wf) -- channels virtually
             concatenated.  weights: matching list of (9, c_i, Cout) bf16 taps."""
    B, Hf, Wf, _ = inputs[0].shape
    Cout = weights[0].shape[-1]
    c_list = tuple(int(x.shape[-1]) for x in inputs)
    in_dtype = inputs[0].dtype
    n_in = len(inputs)

    bias2d = bias.reshape(1, Cout).astype(jnp.float32)
    budget = vmem_limit - _weights_vmem_bytes(tuple(weights) + (bias2d,)) - (2 << 20)
    out_isize = jnp.dtype(out_dtype).itemsize

    def footprint(th):
        tot = sum(_padded_vmem_bytes((th + 2, Wf + 2, c), in_dtype.itemsize)
                  for c in c_list)
        tot += _padded_vmem_bytes((th * Wf, Cout), 4)            # accumulator
        tot += 2 * _padded_vmem_bytes((th, Wf, Cout), out_isize)  # output dbuf
        return tot

    th = _pick_row_tile(Hf, footprint, budget, other_parallel=B, row_width=Wf)
    kernel = _make_conv3x3_kernel(th, Hf, Wf, c_list, Cout, in_dtype, out_dtype)

    in_specs = [pl.BlockSpec(memory_space=pl.ANY)] * n_in        # manual halo DMA
    in_specs += [pl.BlockSpec(w.shape, lambda b, r: (0, 0, 0)) for w in weights]
    in_specs.append(pl.BlockSpec((1, Cout), lambda b, r: (0, 0)))

    scratch = [pltpu.VMEM((th + 2, Wf + 2, c), in_dtype) for c in c_list]
    scratch.append(pltpu.SemaphoreType.DMA((n_in, 3)))
    scratch.append(pltpu.VMEM((th * Wf, Cout), jnp.float32))

    return pl.pallas_call(
        kernel,
        out_shape=jax.ShapeDtypeStruct((B, Hf, Wf, Cout), out_dtype),
        grid=(B, Hf // th),
        in_specs=in_specs,
        out_specs=pl.BlockSpec((1, th, Wf, Cout), lambda b, r: (b, r, 0, 0)),
        scratch_shapes=scratch,
        compiler_params=pltpu.CompilerParams(
            dimension_semantics=("parallel", "parallel"),
            vmem_limit_bytes=vmem_limit),
    )(*inputs, *weights, bias2d)


# ----------------------------------------------------------------------------
# Parameter handling (deterministic synthetic init, PyTorch layouts)
# ----------------------------------------------------------------------------

def fold_bn(conv_bias, bn, eps=1e-5):
    """Fold eval-mode BatchNorm (+ preceding conv bias) into scale/bias."""
    gamma, beta, mean, var = bn
    scale = gamma / jnp.sqrt(var + eps)
    bias = (conv_bias - mean) * scale + beta
    return scale.astype(jnp.float32), bias.astype(jnp.float32)


def bn_params(key, c):
    k1, k2, k3, k4 = jax.random.split(key, 4)
    gamma = 1.0 + 0.1 * jax.random.normal(k1, (c,), jnp.float32)
    beta = 0.1 * jax.random.normal(k2, (c,), jnp.float32)
    mean = 0.1 * jax.random.normal(k3, (c,), jnp.float32)
    var = 1.0 + 0.2 * jax.random.uniform(k4, (c,), jnp.float32)
    return (gamma, beta, mean, var)


def init_params(key, in_ch, out_ch):
    ch = in_ch // 2
    ks = jax.random.split(key, 20)
    nrm = lambda k, shape, s=0.2: s * jax.random.normal(k, shape, jnp.float32)
    p = {}
    # ConvTranspose2d(in_ch, ch, k=2, s=2): weight (in_ch, ch, 2, 2)
    p['up_w'] = nrm(ks[0], (in_ch, ch, 2, 2))
    p['up_b'] = nrm(ks[1], (ch,), 0.05)
    # AttentionGate(F_g=ch, F_l=out_ch, F_int=ch)
    p['attn_wg'] = nrm(ks[2], (ch, ch, 1, 1))
    p['attn_bg'] = nrm(ks[3], (ch,), 0.05)
    p['attn_bn_g'] = bn_params(ks[4], ch)
    p['attn_wx'] = nrm(ks[5], (ch, out_ch, 1, 1))
    p['attn_bx'] = nrm(ks[6], (ch,), 0.05)
    p['attn_bn_x'] = bn_params(ks[7], ch)
    p['attn_wpsi'] = nrm(ks[8], (1, ch, 1, 1))
    p['attn_bpsi'] = nrm(ks[9], (1,), 0.05)
    p['attn_bn_psi'] = bn_params(ks[10], 1)
    # DoubleConv(in_ch, out_ch): input channels = out_ch + ch = in_ch
    p['dc_w1'] = nrm(ks[11], (out_ch, out_ch + ch, 3, 3))
    p['dc_b1'] = nrm(ks[12], (out_ch,), 0.05)
    p['dc_bn1'] = bn_params(ks[13], out_ch)
    p['dc_w2'] = nrm(ks[14], (out_ch, out_ch, 3, 3))
    p['dc_b2'] = nrm(ks[15], (out_ch,), 0.05)
    p['dc_bn2'] = bn_params(ks[16], out_ch)
    return p


# ----------------------------------------------------------------------------
# AttentionUp forward (Pallas hot paths + tiny XLA param folding)
# ----------------------------------------------------------------------------

def attention_up_forward(g_nchw, x_nchw, p):
    # bf16 NHWC inputs: halves HBM reads of the hot path (MXU is bf16 native).
    g = jnp.transpose(g_nchw, (0, 2, 3, 1)).astype(jnp.bfloat16)   # coarse
    x = jnp.transpose(x_nchw, (0, 2, 3, 1)).astype(jnp.bfloat16)   # skip
    B, H, W, Cin = g.shape
    Ch = Cin // 2
    Cl = x.shape[-1]
    Fi = p['attn_wg'].shape[0]
    vmem_limit = _vmem_limit_bytes()

    # ---- fold/prepack parameters (tiny one-off XLA ops) ----
    # ConvTranspose2d weight (Cin, Ch, 2, 2) -> (Cin, dh*2Ch + dw*Ch + c).
    wup = jnp.transpose(p['up_w'], (0, 2, 3, 1)).reshape(Cin, 4 * Ch)
    wup = wup.astype(jnp.bfloat16)
    bup = jnp.tile(p['up_b'], 4).reshape(1, 4 * Ch).astype(jnp.float32)
    # AttentionGate: BN scales folded into the 1x1 weights, biases combined.
    sg, bg = fold_bn(p['attn_bg'], p['attn_bn_g'])
    sx, bx = fold_bn(p['attn_bx'], p['attn_bn_x'])
    sp, bp = fold_bn(p['attn_bpsi'], p['attn_bn_psi'])
    wg = (p['attn_wg'][:, :, 0, 0].T * sg[None, :]).astype(jnp.bfloat16)   # (Ch, Fi)
    wx = (p['attn_wx'][:, :, 0, 0].T * sx[None, :]).astype(jnp.bfloat16)   # (Cl, Fi)
    bgx = (bg + bx).reshape(1, Fi).astype(jnp.float32)
    wpsi = (p['attn_wpsi'][:, :, 0, 0] * sp[:, None]).astype(jnp.float32)  # (1, Fi)
    bpsi = bp.reshape(1).astype(jnp.float32)

    # ---- fused upsample + attention gate (single HBM pass, bf16 out) ----
    x5 = x.reshape(B, H, 2, W, 2 * Cl)          # free view (i, dh, j, dw*Cl+c)
    g_up, x_attn = fused_upsample_attention_gate(
        g, x5, wup, bup, wg, wx, bgx, wpsi, bpsi, vmem_limit)

    # ---- DoubleConv; torch.cat folded into the first conv's channel groups ----
    s1, b1 = fold_bn(p['dc_b1'], p['dc_bn1'])
    w1 = (jnp.transpose(p['dc_w1'], (2, 3, 1, 0)).reshape(9, Cl + Ch, -1)
          * s1[None, None, :]).astype(jnp.bfloat16)
    h1 = conv3x3_bn_relu([x_attn, g_up], [w1[:, :Cl, :], w1[:, Cl:, :]], b1,
                         out_dtype=jnp.bfloat16, vmem_limit=vmem_limit)

    s2, b2 = fold_bn(p['dc_b2'], p['dc_bn2'])
    w2 = (jnp.transpose(p['dc_w2'], (2, 3, 1, 0)).reshape(9, h1.shape[-1], -1)
          * s2[None, None, :]).astype(jnp.bfloat16)
    h2 = conv3x3_bn_relu([h1], [w2], b2, out_dtype=jnp.float32,
                         vmem_limit=vmem_limit)

    return jnp.transpose(h2, (0, 3, 1, 2))   # back to NCHW


# ----------------------------------------------------------------------------
# Pure-JAX reference (independent formulation, f32, NCHW like PyTorch)
# ----------------------------------------------------------------------------

def reference_forward(g_nchw, x_nchw, p, eps=1e-5):
    hi = lax.Precision.HIGHEST
    g = g_nchw.astype(jnp.float32)
    x = x_nchw.astype(jnp.float32)
    B, Ci, H, W = g.shape
    Ch = Ci // 2

    def bn(t, bnp):
        gamma, beta, mean, var = bnp
        return (gamma[None, :, None, None] * (t - mean[None, :, None, None])
                / jnp.sqrt(var + eps)[None, :, None, None]
                + beta[None, :, None, None])

    def conv1x1(t, w, b):
        return (jnp.einsum('nihw,oi->nohw', t, w[:, :, 0, 0], precision=hi)
                + b[None, :, None, None])

    def conv3(t, w, b):
        y = lax.conv_general_dilated(t, w, (1, 1), ((1, 1), (1, 1)),
                                     dimension_numbers=('NCHW', 'OIHW', 'NCHW'),
                                     precision=hi)
        return y + b[None, :, None, None]

    # ConvTranspose2d(k=2, s=2)
    y = jnp.einsum('nihw,iodk->nohdwk', g, p['up_w'], precision=hi)
    g_up = y.reshape(B, Ch, 2 * H, 2 * W) + p['up_b'][None, :, None, None]

    g1 = bn(conv1x1(g_up, p['attn_wg'], p['attn_bg']), p['attn_bn_g'])
    x1 = bn(conv1x1(x, p['attn_wx'], p['attn_bx']), p['attn_bn_x'])
    h = jnp.maximum(g1 + x1, 0.0)
    psi = jax.nn.sigmoid(bn(conv1x1(h, p['attn_wpsi'], p['attn_bpsi']),
                            p['attn_bn_psi']))
    x_attn = x * psi
    xc = jnp.concatenate([x_attn, g_up], axis=1)

    h1 = jnp.maximum(bn(conv3(xc, p['dc_w1'], p['dc_b1']), p['dc_bn1']), 0.0)
    h2 = jnp.maximum(bn(conv3(h1, p['dc_w2'], p['dc_b2']), p['dc_bn2']), 0.0)
    return h2


# ----------------------------------------------------------------------------

if __name__ == "__main__":
    B, in_ch, out_ch, H, W = 2, 8, 4, 8, 8
    key = jax.random.PRNGKey(0)
    kg, kx, kp = jax.random.split(key, 3)
    g = jax.random.normal(kg, (B, in_ch, H, W), jnp.float32)           # coarse features
    x = jax.random.normal(kx, (B, out_ch, 2 * H, 2 * W), jnp.float32)  # skip connection
    params = init_params(kp, in_ch, out_ch)

    out = attention_up_forward(g, x, params)
    out = jax.block_until_ready(out)
    assert out.shape == (B, out_ch, 2 * H, 2 * W), out.shape

    ref = reference_forward(g, x, params)
    max_diff = float(jnp.max(jnp.abs(out - ref)))
    # bf16 matmul operands + bf16 HBM intermediates -> relaxed tolerance.
    if not bool(jnp.allclose(out, ref, atol=5e-2, rtol=5e-2)):
        raise AssertionError(f"Pallas/reference mismatch, max abs diff {max_diff}")

    print("KERNEL_OK")
</pallas_src>

<mosaic_0001>
module attributes {stable_mosaic.version = 11 : i64} {
  func.func @kernel(%arg0: i32, %arg1: i32, %arg2: memref<1x2x8x8xbf16, #tpu.memory_space<vmem>>, %arg3: memref<1x2x2x8x8xbf16, #tpu.memory_space<vmem>>, %arg4: memref<8x16xbf16, #tpu.memory_space<vmem>>, %arg5: memref<1x16xf32, #tpu.memory_space<vmem>>, %arg6: memref<4x4xbf16, #tpu.memory_space<vmem>>, %arg7: memref<4x4xbf16, #tpu.memory_space<vmem>>, %arg8: memref<1x4xf32, #tpu.memory_space<vmem>>, %arg9: memref<1x4xf32, #tpu.memory_space<vmem>>, %arg10: memref<1xf32, #tpu.memory_space<smem>>, %arg11: memref<1x2x2x8x8xbf16, #tpu.memory_space<vmem>>, %arg12: memref<1x2x2x8x8xbf16, #tpu.memory_space<vmem>>) attributes {dimension_semantics = [#tpu.dimension_semantics<parallel>, #tpu.dimension_semantics<parallel>], iteration_bounds = array<i64: 2, 4>, scalar_prefetch = 0 : i64, scratch_operands = 0 : i64, tpu.core_type = #tpu.core_type<tc>, window_params = [{transform_indices = @transform_0, window_bounds = array<i64: 1, 2, 8, 8>}, {transform_indices = @transform_1, window_bounds = array<i64: 1, 2, 2, 8, 8>}, {pipeline_mode = #tpu.pipeline_mode<synchronous>, transform_indices = @transform_2, window_bounds = array<i64: 8, 16>}, {pipeline_mode = #tpu.pipeline_mode<synchronous>, transform_indices = @transform_3, window_bounds = array<i64: 1, 16>}, {pipeline_mode = #tpu.pipeline_mode<synchronous>, transform_indices = @transform_4, window_bounds = array<i64: 4, 4>}, {pipeline_mode = #tpu.pipeline_mode<synchronous>, transform_indices = @transform_5, window_bounds = array<i64: 4, 4>}, {pipeline_mode = #tpu.pipeline_mode<synchronous>, transform_indices = @transform_6, window_bounds = array<i64: 1, 4>}, {pipeline_mode = #tpu.pipeline_mode<synchronous>, transform_indices = @transform_7, window_bounds = array<i64: 1, 4>}, {transform_indices = @transform_8, window_bounds = array<i64: 1>}, {transform_indices = @transform_9, window_bounds = array<i64: 1, 2, 2, 8, 8>}, {transform_indices = @transform_10, window_bounds = array<i64: 1, 2, 2, 8, 8>}]} {
    %c0 = arith.constant 0 : index
    %c0_0 = arith.constant 0 : index
    %c0_1 = arith.constant 0 : index
    %c0_2 = arith.constant 0 : index
    %0 = vector.load %arg2[%c0, %c0_0, %c0_1, %c0_2] : memref<1x2x8x8xbf16, #tpu.memory_space<vmem>>, vector<1x2x8x8xbf16>
    %1 = vector.shape_cast %0 : vector<1x2x8x8xbf16> to vector<2x8x8xbf16>
    %2 = vector.shape_cast %1 : vector<2x8x8xbf16> to vector<16x8xbf16>
    %c0_3 = arith.constant 0 : index
    %c0_4 = arith.constant 0 : index
    %3 = vector.load %arg4[%c0_3, %c0_4] : memref<8x16xbf16, #tpu.memory_space<vmem>>, vector<8x16xbf16>
    %cst = arith.constant dense<0.000000e+00> : vector<16x16xf32>
    %4 = tpu.matmul %2, %3, %cst {dimension_numbers = #tpu.dot_dimension_numbers<[1], [0], [0], [1], [0, 0, 1, 1], [], []>} : vector<16x8xbf16>, vector<8x16xbf16>, vector<16x16xf32> -> vector<16x16xf32>
    %c0_5 = arith.constant 0 : index
    %c0_6 = arith.constant 0 : index
    %5 = vector.load %arg5[%c0_5, %c0_6] : memref<1x16xf32, #tpu.memory_space<vmem>>, vector<1x16xf32>
    %6 = vector.broadcast %5 : vector<1x16xf32> to vector<16x16xf32>
    %7 = arith.addf %4, %6 : vector<16x16xf32>
    %c0_7 = arith.constant 0 : index
    %c0_8 = arith.constant 0 : index
    %c0_9 = arith.constant 0 : index
    %c0_10 = arith.constant 0 : index
    %c0_11 = arith.constant 0 : index
    %8 = vector.load %arg3[%c0_7, %c0_8, %c0_9, %c0_10, %c0_11] : memref<1x2x2x8x8xbf16, #tpu.memory_space<vmem>>, vector<1x2x2x8x8xbf16>
    %9 = vector.shape_cast %8 : vector<1x2x2x8x8xbf16> to vector<2x2x8x8xbf16>
    %c0_12 = arith.constant 0 : index
    %c0_13 = arith.constant 0 : index
    %10 = vector.load %arg6[%c0_12, %c0_13] : memref<4x4xbf16, #tpu.memory_space<vmem>>, vector<4x4xbf16>
    %c0_14 = arith.constant 0 : index
    %c0_15 = arith.constant 0 : index
    %11 = vector.load %arg7[%c0_14, %c0_15] : memref<4x4xbf16, #tpu.memory_space<vmem>>, vector<4x4xbf16>
    %c0_16 = arith.constant 0 : index
    %c0_17 = arith.constant 0 : index
    %12 = vector.load %arg8[%c0_16, %c0_17] : memref<1x4xf32, #tpu.memory_space<vmem>>, vector<1x4xf32>
    %c0_18 = arith.constant 0 : index
    %c0_19 = arith.constant 0 : index
    %13 = vector.load %arg9[%c0_18, %c0_19] : memref<1x4xf32, #tpu.memory_space<vmem>>, vector<1x4xf32>
    %c0_20 = arith.constant 0 : index
    %14 = memref.load %arg10[%c0_20] : memref<1xf32, #tpu.memory_space<smem>>
    %15 = tpu.iota {dimensions = array<i32: 1>} : vector<1x8xi32>
    %16 = vector.extract_strided_slice %7 {offsets = [0, 0], sizes = [16, 8], strides = [1, 1]} : vector<16x16xf32> to vector<16x8xf32>
    %17 = arith.truncf %16 : vector<16x8xf32> to vector<16x8xbf16>
    %18 = vector.shape_cast %17 : vector<16x8xbf16> to vector<2x8x8xbf16>
    %c0_21 = arith.constant 0 : index
    %c0_22 = arith.constant 0 : index
    %c0_23 = arith.constant 0 : index
    %c0_24 = arith.constant 0 : index
    %c0_25 = arith.constant 0 : index
    %19 = vector.load %arg11[%c0_21, %c0_22, %c0_23, %c0_24, %c0_25] : memref<1x2x2x8x8xbf16, #tpu.memory_space<vmem>>, vector<1x2x1x8x8xbf16>
    %20 = vector.shape_cast %19 : vector<1x2x1x8x8xbf16> to vector<2x8x8xbf16>
    %21 = vector.shape_cast %18 : vector<2x8x8xbf16> to vector<1x2x1x8x8xbf16>
    tpu.vector_store %arg11[%c0_21, %c0_22, %c0_23, %c0_24, %c0_25], %21 {strides = array<i32>} : memref<1x2x2x8x8xbf16, #tpu.memory_space<vmem>>, vector<1x2x1x8x8xbf16>,
    %22 = vector.extract_strided_slice %9 {offsets = [0, 0, 0, 0], sizes = [2, 1, 8, 8], strides = [1, 1, 1, 1]} : vector<2x2x8x8xbf16> to vector<2x1x8x8xbf16>
    %23 = vector.shape_cast %22 : vector<2x1x8x8xbf16> to vector<2x8x8xbf16>
    %24 = vector.shape_cast %23 : vector<2x8x8xbf16> to vector<16x8xbf16>
    %25 = vector.extract_strided_slice %17 {offsets = [0, 0], sizes = [16, 4], strides = [1, 1]} : vector<16x8xbf16> to vector<16x4xbf16>
    %26 = vector.extract_strided_slice %24 {offsets = [0, 0], sizes = [16, 4], strides = [1, 1]} : vector<16x8xbf16> to vector<16x4xbf16>
    %cst_26 = arith.constant dense<0.000000e+00> : vector<16x4xf32>
    %27 = tpu.matmul %25, %10, %cst_26 {dimension_numbers = #tpu.dot_dimension_numbers<[1], [0], [0], [1], [0, 0, 1, 1], [], []>} : vector<16x4xbf16>, vector<4x4xbf16>, vector<16x4xf32> -> vector<16x4xf32>
    %cst_27 = arith.constant dense<0.000000e+00> : vector<16x4xf32>
    %28 = tpu.matmul %26, %11, %cst_27 {dimension_numbers = #tpu.dot_dimension_numbers<[1], [0], [0], [1], [0, 0, 1, 1], [], []>} : vector<16x4xbf16>, vector<4x4xbf16>, vector<16x4xf32> -> vector<16x4xf32>
    %29 = arith.addf %27, %28 : vector<16x4xf32>
    %30 = vector.broadcast %12 : vector<1x4xf32> to vector<16x4xf32>
    %31 = arith.addf %29, %30 : vector<16x4xf32>
    %cst_28 = arith.constant 0.000000e+00 : f32
    %32 = vector.broadcast %cst_28 : f32 to vector<16x4xf32>
    %33 = arith.maximumf %31, %32 : vector<16x4xf32>
    %34 = vector.broadcast %13 : vector<1x4xf32> to vector<16x4xf32>
    %35 = arith.mulf %33, %34 : vector<16x4xf32>
    %cst_29 = arith.constant dense<0.000000e+00> : vector<16xf32>
    %36 = vector.multi_reduction <add>, %35, %cst_29 [1] : vector<16x4xf32> to vector<16xf32>
    %37 = vector.shape_cast %36 : vector<16xf32> to vector<16x1xf32>
    %38 = vector.broadcast %14 : f32 to vector<16x1xf32>
    %39 = arith.addf %37, %38 : vector<16x1xf32>
    %cst_30 = arith.constant 0.000000e+00 : f32
    %40 = vector.broadcast %cst_30 : f32 to vector<16x1xf32>
    %41 = arith.subf %40, %39 : vector<16x1xf32>
    %42 = math.exp %41 : vector<16x1xf32>
    %cst_31 = arith.constant 1.000000e+00 : f32
    %43 = vector.broadcast %cst_31 : f32 to vector<16x1xf32>
    %44 = arith.addf %43, %42 : vector<16x1xf32>
    %cst_32 = arith.constant 1.000000e+00 : f32
    %45 = vector.broadcast %cst_32 : f32 to vector<16x1xf32>
    %46 = arith.divf %45, %44 : vector<16x1xf32>
    %47 = vector.extract_strided_slice %17 {offsets = [0, 4], sizes = [16, 4], strides = [1, 1]} : vector<16x8xbf16> to vector<16x4xbf16>
    %48 = vector.extract_strided_slice %24 {offsets = [0, 4], sizes = [16, 4], strides = [1, 1]} : vector<16x8xbf16> to vector<16x4xbf16>
    %cst_33 = arith.constant dense<0.000000e+00> : vector<16x4xf32>
    %49 = tpu.matmul %47, %10, %cst_33 {dimension_numbers = #tpu.dot_dimension_numbers<[1], [0], [0], [1], [0, 0, 1, 1], [], []>} : vector<16x4xbf16>, vector<4x4xbf16>, vector<16x4xf32> -> vector<16x4xf32>
    %cst_34 = arith.constant dense<0.000000e+00> : vector<16x4xf32>
    %50 = tpu.matmul %48, %11, %cst_34 {dimension_numbers = #tpu.dot_dimension_numbers<[1], [0], [0], [1], [0, 0, 1, 1], [], []>} : vector<16x4xbf16>, vector<4x4xbf16>, vector<16x4xf32> -> vector<16x4xf32>
    %51 = arith.addf %49, %50 : vector<16x4xf32>
    %52 = vector.broadcast %12 : vector<1x4xf32> to vector<16x4xf32>
    %53 = arith.addf %51, %52 : vector<16x4xf32>
    %cst_35 = arith.constant 0.000000e+00 : f32
    %54 = vector.broadcast %cst_35 : f32 to vector<16x4xf32>
    %55 = arith.maximumf %53, %54 : vector<16x4xf32>
    %56 = vector.broadcast %13 : vector<1x4xf32> to vector<16x4xf32>
    %57 = arith.mulf %55, %56 : vector<16x4xf32>
    %cst_36 = arith.constant dense<0.000000e+00> : vector<16xf32>
    %58 = vector.multi_reduction <add>, %57, %cst_36 [1] : vector<16x4xf32> to vector<16xf32>
    %59 = vector.shape_cast %58 : vector<16xf32> to vector<16x1xf32>
    %60 = vector.broadcast %14 : f32 to vector<16x1xf32>
    %61 = arith.addf %59, %60 : vector<16x1xf32>
    %cst_37 = arith.constant 0.000000e+00 : f32
    %62 = vector.broadcast %cst_37 : f32 to vector<16x1xf32>
    %63 = arith.subf %62, %61 : vector<16x1xf32>
    %64 = math.exp %63 : vector<16x1xf32>
    %cst_38 = arith.constant 1.000000e+00 : f32
    %65 = vector.broadcast %cst_38 : f32 to vector<16x1xf32>
    %66 = arith.addf %65, %64 : vector<16x1xf32>
    %cst_39 = arith.constant 1.000000e+00 : f32
    %67 = vector.broadcast %cst_39 : f32 to vector<16x1xf32>
    %68 = arith.divf %67, %66 : vector<16x1xf32>
    %c4_i32 = arith.constant 4 : i32
    %69 = vector.broadcast %c4_i32 : i32 to vector<1x8xi32>
    %70 = arith.cmpi slt, %15, %69 : vector<1x8xi32>
    %71 = vector.shape_cast %70 : vector<1x8xi1> to vector<1x8xi1>
    %72 = vector.broadcast %71 : vector<1x8xi1> to vector<16x8xi1>
    %73 = vector.shape_cast %46 : vector<16x1xf32> to vector<16x1xf32>
    %74 = vector.broadcast %73 : vector<16x1xf32> to vector<16x8xf32>
    %75 = vector.shape_cast %68 : vector<16x1xf32> to vector<16x1xf32>
    %76 = vector.broadcast %75 : vector<16x1xf32> to vector<16x8xf32>
    %77 = arith.select %72, %74, %76 : vector<16x8xi1>, vector<16x8xf32>
    %78 = arith.extf %24 : vector<16x8xbf16> to vector<16x8xf32>
    %79 = arith.mulf %78, %77 : vector<16x8xf32>
    %80 = arith.truncf %79 : vector<16x8xf32> to vector<16x8xbf16>
    %81 = vector.shape_cast %80 : vector<16x8xbf16> to vector<2x8x8xbf16>
    %c0_40 = arith.constant 0 : index
    %c0_41 = arith.constant 0 : index
    %c0_42 = arith.constant 0 : index
    %c0_43 = arith.constant 0 : index
    %c0_44 = arith.constant 0 : index
    %82 = vector.load %arg12[%c0_40, %c0_41, %c0_42, %c0_43, %c0_44] : memref<1x2x2x8x8xbf16, #tpu.memory_space<vmem>>, vector<1x2x1x8x8xbf16>
    %83 = vector.shape_cast %82 : vector<1x2x1x8x8xbf16> to vector<2x8x8xbf16>
    %84 = vector.shape_cast %81 : vector<2x8x8xbf16> to vector<1x2x1x8x8xbf16>
    tpu.vector_store %arg12[%c0_40, %c0_41, %c0_42, %c0_43, %c0_44], %84 {strides = array<i32>} : memref<1x2x2x8x8xbf16, #tpu.memory_space<vmem>>, vector<1x2x1x8x8xbf16>,
    %85 = vector.extract_strided_slice %7 {offsets = [0, 8], sizes = [16, 8], strides = [1, 1]} : vector<16x16xf32> to vector<16x8xf32>
    %86 = arith.truncf %85 : vector<16x8xf32> to vector<16x8xbf16>
    %87 = vector.shape_cast %86 : vector<16x8xbf16> to vector<2x8x8xbf16>
    %c0_45 = arith.constant 0 : index
    %c0_46 = arith.constant 0 : index
    %c1 = arith.constant 1 : index
    %c0_47 = arith.constant 0 : index
    %c0_48 = arith.constant 0 : index
    %88 = vector.load %arg11[%c0_45, %c0_46, %c1, %c0_47, %c0_48] : memref<1x2x2x8x8xbf16, #tpu.memory_space<vmem>>, vector<1x2x1x8x8xbf16>
    %89 = vector.shape_cast %88 : vector<1x2x1x8x8xbf16> to vector<2x8x8xbf16>
    %90 = vector.shape_cast %87 : vector<2x8x8xbf16> to vector<1x2x1x8x8xbf16>
    tpu.vector_store %arg11[%c0_45, %c0_46, %c1, %c0_47, %c0_48], %90 {strides = array<i32>} : memref<1x2x2x8x8xbf16, #tpu.memory_space<vmem>>, vector<1x2x1x8x8xbf16>,
    %91 = vector.extract_strided_slice %9 {offsets = [0, 1, 0, 0], sizes = [2, 1, 8, 8], strides = [1, 1, 1, 1]} : vector<2x2x8x8xbf16> to vector<2x1x8x8xbf16>
    %92 = vector.shape_cast %91 : vector<2x1x8x8xbf16> to vector<2x8x8xbf16>
    %93 = vector.shape_cast %92 : vector<2x8x8xbf16> to vector<16x8xbf16>
    %94 = vector.extract_strided_slice %86 {offsets = [0, 0], sizes = [16, 4], strides = [1, 1]} : vector<16x8xbf16> to vector<16x4xbf16>
    %95 = vector.extract_strided_slice %93 {offsets = [0, 0], sizes = [16, 4], strides = [1, 1]} : vector<16x8xbf16> to vector<16x4xbf16>
    %cst_49 = arith.constant dense<0.000000e+00> : vector<16x4xf32>
    %96 = tpu.matmul %94, %10, %cst_49 {dimension_numbers = #tpu.dot_dimension_numbers<[1], [0], [0], [1], [0, 0, 1, 1], [], []>} : vector<16x4xbf16>, vector<4x4xbf16>, vector<16x4xf32> -> vector<16x4xf32>
    %cst_50 = arith.constant dense<0.000000e+00> : vector<16x4xf32>
    %97 = tpu.matmul %95, %11, %cst_50 {dimension_numbers = #tpu.dot_dimension_numbers<[1], [0], [0], [1], [0, 0, 1, 1], [], []>} : vector<16x4xbf16>, vector<4x4xbf16>, vector<16x4xf32> -> vector<16x4xf32>
    %98 = arith.addf %96, %97 : vector<16x4xf32>
    %99 = vector.broadcast %12 : vector<1x4xf32> to vector<16x4xf32>
    %100 = arith.addf %98, %99 : vector<16x4xf32>
    %cst_51 = arith.constant 0.000000e+00 : f32
    %101 = vector.broadcast %cst_51 : f32 to vector<16x4xf32>
    %102 = arith.maximumf %100, %101 : vector<16x4xf32>
    %103 = vector.broadcast %13 : vector<1x4xf32> to vector<16x4xf32>
    %104 = arith.mulf %102, %103 : vector<16x4xf32>
    %cst_52 = arith.constant dense<0.000000e+00> : vector<16xf32>
    %105 = vector.multi_reduction <add>, %104, %cst_52 [1] : vector<16x4xf32> to vector<16xf32>
    %106 = vector.shape_cast %105 : vector<16xf32> to vector<16x1xf32>
    %107 = vector.broadcast %14 : f32 to vector<16x1xf32>
    %108 = arith.addf %106, %107 : vector<16x1xf32>
    %cst_53 = arith.constant 0.000000e+00 : f32
    %109 = vector.broadcast %cst_53 : f32 to vector<16x1xf32>
    %110 = arith.subf %109, %108 : vector<16x1xf32>
    %111 = math.exp %110 : vector<16x1xf32>
    %cst_54 = arith.constant 1.000000e+00 : f32
    %112 = vector.broadcast %cst_54 : f32 to vector<16x1xf32>
    %113 = arith.addf %112, %111 : vector<16x1xf32>
    %cst_55 = arith.constant 1.000000e+00 : f32
    %114 = vector.broadcast %cst_55 : f32 to vector<16x1xf32>
    %115 = arith.divf %114, %113 : vector<16x1xf32>
    %116 = vector.extract_strided_slice %86 {offsets = [0, 4], sizes = [16, 4], strides = [1, 1]} : vector<16x8xbf16> to vector<16x4xbf16>
    %117 = vector.extract_strided_slice %93 {offsets = [0, 4], sizes = [16, 4], strides = [1, 1]} : vector<16x8xbf16> to vector<16x4xbf16>
    %cst_56 = arith.constant dense<0.000000e+00> : vector<16x4xf32>
    %118 = tpu.matmul %116, %10, %cst_56 {dimension_numbers = #tpu.dot_dimension_numbers<[1], [0], [0], [1], [0, 0, 1, 1], [], []>} : vector<16x4xbf16>, vector<4x4xbf16>, vector<16x4xf32> -> vector<16x4xf32>
    %cst_57 = arith.constant dense<0.000000e+00> : vector<16x4xf32>
    %119 = tpu.matmul %117, %11, %cst_57 {dimension_numbers = #tpu.dot_dimension_numbers<[1], [0], [0], [1], [0, 0, 1, 1], [], []>} : vector<16x4xbf16>, vector<4x4xbf16>, vector<16x4xf32> -> vector<16x4xf32>
    %120 = arith.addf %118, %119 : vector<16x4xf32>
    %121 = vector.broadcast %12 : vector<1x4xf32> to vector<16x4xf32>
    %122 = arith.addf %120, %121 : vector<16x4xf32>
    %cst_58 = arith.constant 0.000000e+00 : f32
    %123 = vector.broadcast %cst_58 : f32 to vector<16x4xf32>
    %124 = arith.maximumf %122, %123 : vector<16x4xf32>
    %125 = vector.broadcast %13 : vector<1x4xf32> to vector<16x4xf32>
    %126 = arith.mulf %124, %125 : vector<16x4xf32>
    %cst_59 = arith.constant dense<0.000000e+00> : vector<16xf32>
    %127 = vector.multi_reduction <add>, %126, %cst_59 [1] : vector<16x4xf32> to vector<16xf32>
    %128 = vector.shape_cast %127 : vector<16xf32> to vector<16x1xf32>
    %129 = vector.broadcast %14 : f32 to vector<16x1xf32>
    %130 = arith.addf %128, %129 : vector<16x1xf32>
    %cst_60 = arith.constant 0.000000e+00 : f32
    %131 = vector.broadcast %cst_60 : f32 to vector<16x1xf32>
    %132 = arith.subf %131, %130 : vector<16x1xf32>
    %133 = math.exp %132 : vector<16x1xf32>
    %cst_61 = arith.constant 1.000000e+00 : f32
    %134 = vector.broadcast %cst_61 : f32 to vector<16x1xf32>
    %135 = arith.addf %134, %133 : vector<16x1xf32>
    %cst_62 = arith.constant 1.000000e+00 : f32
    %136 = vector.broadcast %cst_62 : f32 to vector<16x1xf32>
    %137 = arith.divf %136, %135 : vector<16x1xf32>
    %c4_i32_63 = arith.constant 4 : i32
    %138 = vector.broadcast %c4_i32_63 : i32 to vector<1x8xi32>
    %139 = arith.cmpi slt, %15, %138 : vector<1x8xi32>
    %140 = vector.shape_cast %139 : vector<1x8xi1> to vector<1x8xi1>
    %141 = vector.broadcast %140 : vector<1x8xi1> to vector<16x8xi1>
    %142 = vector.shape_cast %115 : vector<16x1xf32> to vector<16x1xf32>
    %143 = vector.broadcast %142 : vector<16x1xf32> to vector<16x8xf32>
    %144 = vector.shape_cast %137 : vector<16x1xf32> to vector<16x1xf32>
    %145 = vector.broadcast %144 : vector<16x1xf32> to vector<16x8xf32>
    %146 = arith.select %141, %143, %145 : vector<16x8xi1>, vector<16x8xf32>
    %147 = arith.extf %93 : vector<16x8xbf16> to vector<16x8xf32>
    %148 = arith.mulf %147, %146 : vector<16x8xf32>
    %149 = arith.truncf %148 : vector<16x8xf32> to vector<16x8xbf16>
    %150 = vector.shape_cast %149 : vector<16x8xbf16> to vector<2x8x8xbf16>
    %c0_64 = arith.constant 0 : index
    %c0_65 = arith.constant 0 : index
    %c1_66 = arith.constant 1 : index
    %c0_67 = arith.constant 0 : index
    %c0_68 = arith.constant 0 : index
    %151 = vector.load %arg12[%c0_64, %c0_65, %c1_66, %c0_67, %c0_68] : memref<1x2x2x8x8xbf16, #tpu.memory_space<vmem>>, vector<1x2x1x8x8xbf16>
    %152 = vector.shape_cast %151 : vector<1x2x1x8x8xbf16> to vector<2x8x8xbf16>
    %153 = vector.shape_cast %150 : vector<2x8x8xbf16> to vector<1x2x1x8x8xbf16>
    tpu.vector_store %arg12[%c0_64, %c0_65, %c1_66, %c0_67, %c0_68], %153 {strides = array<i32>} : memref<1x2x2x8x8xbf16, #tpu.memory_space<vmem>>, vector<1x2x1x8x8xbf16>,
    return
  }
  func.func @transform_0(%arg0: i32, %arg1: i32) -> (i32, i32, i32, i32) {
    %c0_i32 = arith.constant 0 : i32
    %c0_i32_0 = arith.constant 0 : i32
    %c0_i32_1 = arith.constant 0 : i32
    return %arg0, %arg1, %c0_i32, %c0_i32_0 : i32, i32, i32, i32
  }
  func.func @transform_1(%arg0: i32, %arg1: i32) -> (i32, i32, i32, i32, i32) {
    %c0_i32 = arith.constant 0 : i32
    %c0_i32_0 = arith.constant 0 : i32
    %c0_i32_1 = arith.constant 0 : i32
    %c0_i32_2 = arith.constant 0 : i32
    return %arg0, %arg1, %c0_i32, %c0_i32_0, %c0_i32_1 : i32, i32, i32, i32, i32
  }
  func.func @transform_2(%arg0: i32, %arg1: i32) -> (i32, i32) {
    %c0_i32 = arith.constant 0 : i32
    %c0_i32_0 = arith.constant 0 : i32
    %c0_i32_1 = arith.constant 0 : i32
    return %c0_i32, %c0_i32_0 : i32, i32
  }
  func.func @transform_3(%arg0: i32, %arg1: i32) -> (i32, i32) {
    %c0_i32 = arith.constant 0 : i32
    %c0_i32_0 = arith.constant 0 : i32
    %c0_i32_1 = arith.constant 0 : i32
    return %c0_i32, %c0_i32_0 : i32, i32
  }
  func.func @transform_4(%arg0: i32, %arg1: i32) -> (i32, i32) {
    %c0_i32 = arith.constant 0 : i32
    %c0_i32_0 = arith.constant 0 : i32
    %c0_i32_1 = arith.constant 0 : i32
    return %c0_i32, %c0_i32_0 : i32, i32
  }
  func.func @transform_5(%arg0: i32, %arg1: i32) -> (i32, i32) {
    %c0_i32 = arith.constant 0 : i32
    %c0_i32_0 = arith.constant 0 : i32
    %c0_i32_1 = arith.constant 0 : i32
    return %c0_i32, %c0_i32_0 : i32, i32
  }
  func.func @transform_6(%arg0: i32, %arg1: i32) -> (i32, i32) {
    %c0_i32 = arith.constant 0 : i32
    %c0_i32_0 = arith.constant 0 : i32
    %c0_i32_1 = arith.constant 0 : i32
    return %c0_i32, %c0_i32_0 : i32, i32
  }
  func.func @transform_7(%arg0: i32, %arg1: i32) -> (i32, i32) {
    %c0_i32 = arith.constant 0 : i32
    %c0_i32_0 = arith.constant 0 : i32
    %c0_i32_1 = arith.constant 0 : i32
    return %c0_i32, %c0_i32_0 : i32, i32
  }
  func.func @transform_8(%arg0: i32, %arg1: i32) -> i32 {
    %c0_i32 = arith.constant 0 : i32
    %c0_i32_0 = arith.constant 0 : i32
    return %c0_i32 : i32
  }
  func.func @transform_9(%arg0: i32, %arg1: i32) -> (i32, i32, i32, i32, i32) {
    %c0_i32 = arith.constant 0 : i32
    %c0_i32_0 = arith.constant 0 : i32
    %c0_i32_1 = arith.constant 0 : i32
    %c0_i32_2 = arith.constant 0 : i32
    return %arg0, %arg1, %c0_i32, %c0_i32_0, %c0_i32_1 : i32, i32, i32, i32, i32
  }
  func.func @transform_10(%arg0: i32, %arg1: i32) -> (i32, i32, i32, i32, i32) {
    %c0_i32 = arith.constant 0 : i32
    %c0_i32_0 = arith.constant 0 : i32
    %c0_i32_1 = arith.constant 0 : i32
    %c0_i32_2 = arith.constant 0 : i32
    return %arg0, %arg1, %c0_i32, %c0_i32_0, %c0_i32_1 : i32, i32, i32, i32, i32
  }
}

</mosaic_0001>

<bundles_post_ra>
// kernel: tpu_custom_call.1
= control target key start
LH: loop header
LB: loop body
LE: loop exit
PB: predicated region body
PF: predicated region fallthrough
CT: control target
= control target key end

     0   :  { %s2210_s0 = inlined_call_operand.hbm [shape: bf16[2,8,8,8], index: 0, kind: input, shape index: {}]   ;;  %s2211_s1 = inlined_call_operand.hbm [shape: bf16[2,8,2,8,8], index: 1, kind: input, shape index: {}]   ;;  %s2212_s2 = inlined_call_operand.hbm [shape: bf16[8,16], index: 2, kind: input, shape index: {}]   ;;  %s2213_s3 = inlined_call_operand.hbm [shape: f32[1,16], index: 3, kind: input, shape index: {}]   ;;  %s2214_s4 = inlined_call_operand.vmem [shape: bf16[4,4], index: 4, kind: input, shape index: {}]   ;;  %s2215_s5 = inlined_call_operand.vmem [shape: bf16[4,4], index: 5, kind: input, shape index: {}]   ;;  %s2216_s6 = inlined_call_operand.vmem [shape: f32[1,4], index: 6, kind: input, shape index: {}]   ;;  %s2217_s7 = inlined_call_operand.vmem [shape: f32[1,4], index: 7, kind: input, shape index: {}]   ;;  %s2218_s8 = inlined_call_operand.<no memory space> [shape: f32[1], index: 8, kind: input, shape index: {}]   ;;  %s2219_s9 = inlined_call_operand.hbm [shape: bf16[2,8,2,8,8], index: 9, kind: output, shape index: {0}]   ;;  %s2220_s10 = inlined_call_operand.hbm [shape: bf16[2,8,2,8,8], index: 10, kind: output, shape index: {1}]  }
   0x1   :  { %2229 = sst [smem:[#allocation27_spill]] %s2210_s0 }
   0x2   :  { %2230 = sst [smem:[#allocation28_spill]] %s2212_s2 }
   0x3   :  { %2231 = sst [smem:[#allocation29_spill]] %s2213_s3 }
   0x4   :  { %2232 = sst [smem:[#allocation30_spill]] %s2215_s5 }
   0x5   :  { %2233 = sst [smem:[#allocation31_spill]] %s2216_s6 }
   0x6   :  { %2234 = sst [smem:[#allocation32_spill]] %s2217_s7 }
   0x7   :  { %2235 = sst [smem:[#allocation33_spill]] %s2219_s9 }
   0x8   :  { %2236 = sst [smem:[#allocation34_spill]] %s2220_s10 }
   0x9   :  { %16 = sst [smem:[#allocation2]] %s2218_s8 }
   0xa   :  { %17 = vsyncpa [#allocation4], 0 }
   0xb   :  { %19 = vsyncpa [#allocation4 + $0x1], 0 }
   0xc   :  { %20 = vsyncpa [#allocation7], 0 }
   0xd   :  { %22 = vsyncpa [#allocation7 + $0x1], 0 }
   0xe   :  { %23 = vsyncpa [#allocation10], 0 }
   0xf   :  { %24 = vsyncpa [#allocation5], 0 }
  0x10   :  { %26 = vsyncpa [#allocation5 + $0x1], 0 }
  0x11   :  { %27 = vsyncpa [#allocation13], 0 }
  0x12   :  { %29 = vsyncpa [#allocation13 + $0x1], 0  ;;  %s1727_s15 = smov 0   ;;  %s1729_s16 = smov 0  }
  0x13   :  { %s1731_s17 = smov 0   ;;  %s1733_s18 = smov 0  }
  0x14   :  { %s1735_s19 = smov 0   ;;  %s1737_s8 = smov 0  }
  0x15   :  { %s1739_s20 = smov 0   ;;  %s1741_s21 = smov 0  }
  0x16 LB: > { %2237 = sst [smem:[#allocation20_spill]] %s1630_s15  ;;  %s1768_s22 = sadd.s32 4294967295, %s1658_s21   ;;  %s1658_s21 = sphi %s1741_s21, %s35_s21   ;;  %s1654_s20 = sphi %s1739_s20, %s2282_s20   ;;  %s1650_s8 = sphi %s1737_s8, %s2281_s8   ;;  %s1646_s19 = sphi %s1735_s19, %s2280_s19   ;;  %s1642_s18 = sphi %s1733_s18, %s2279_s18   ;;  %s1638_s17 = sphi %s1731_s17, %s2278_s17   ;;  %s1634_s16 = sphi %s1729_s16, %s2277_s16   ;;  %s1630_s15 = sphi %s1727_s15, %s2276_s15  }
  0x17   : > { %2238 = sst [smem:[#allocation21_spill]] %s1642_s18  ;;  %s1176_s23 = sadd.s32 4294967294, %s1658_s21  }
  0x18   : > { %2239 = sst [smem:[#allocation22_spill]] %s1646_s19  ;;  %p63_p0 = scmp.ne.s32.totalorder %s1638_s17, %s1634_s16 }
  0x19   : > { %p64_p1 = scmp.eq.s32.totalorder %s1658_s21, 0  ;;  %p69_p2 = scmp.ne.s32.totalorder %s1634_s16, %s1630_s15 }
  0x1a   : > { %p70_p3 = scmp.eq.s32.totalorder %s1768_s22, 0  ;;  %p270_p4 = scmp.eq.s32.totalorder %s1768_s22, 7 }
  0x1b   : > { %p1779_p5 = por %p64_p1, %p63_p0  ;;  %p276_p6 = scmp.eq.s32.totalorder %s1176_s23, 7 }
  0x1c   : > { %p1785_p7 = por %p70_p3, %p69_p2  ;;  %p1789_p8 = por %p270_p4, %p63_p0 }
  0x1d   : > { %p1793_p9 = por %p276_p6, %p69_p2  ;;  %p1177_p10 = scmp.ge.s32.totalorder %s1658_s21, 1 }
  0x1e   : > { %s2242_s27 = scalar_select %p1789_p8, 1, 0 }
  0x1f   : > { %s2244_s28 = scalar_select %p1793_p9, 1, 0 }
  0x20   : > { %2243 = sst [smem:[#allocation23_spill]] %s2242_s27  ;;  %p311_p11 = scmp.lt.s32.totalorder %s1658_s21, 9 }
  0x21   : > { %2245 = sst [smem:[#allocation24_spill]] %s2244_s28  ;;  %s1660_s13 = smov [#allocation8]  }
  0x22   : > { %s2246_s2 = sld [smem:[#allocation28_spill]]  ;;  %p1802_p12 = pnand %p1177_p10, %p311_p11 }
  0x23   : > { %s325_s14 = sshll.u32 %s1660_s13, 4  ;;  %p1284_p0 = scmp.lt.s32.totalorder %s1658_s21, 8  ;;  %s326_s14 = int_to_ptr.vmem [resolvable:$true] %s325_s14 }
  0x24   : > { %p1261_p13 = pneg %p1802_p12  ;;  %s2248_s3 = sld [smem:[#allocation29_spill]] }
  0x25   : > { %p1816_p2 = pnand %p1284_p0, %p1779_p5  ;;  %s1661_s13 = smov [#allocation9]  }
  0x26   : > { %p1262_p1 = pnand %p1261_p13, %p70_p3  ;;  %s44_s28 = sadd.s32 1, %s1650_s8 }
  0x27   : > { %s47_s24 = sadd.s32 1, %s1654_s20  ;;  %p45_p4 = scmp.ge.s32.totalorder %s44_s28, 4 }
  0x28   : > { %s323_s11 = sshll.u32 %s2246_s2, 4  ;;  %s337_s2 = sshll.u32 %s1661_s13, 4  ;;  %s324_s11 = int_to_ptr.hbm [resolvable:$true] %s323_s11  ;;  %s338_s2 = int_to_ptr.vmem [resolvable:$true] %s337_s2 }
  0x29   : > { %1264 = dma.hbm_to_vmem [thread:$0]  (!%p1262_p1), %s324_s11, 64, %s326_s14, [#allocation7]  }
  0x2a   : > { %s335_s29 = sshll.u32 %s2248_s3, 4  ;;  %s1823_s23 = sand.u32 1, %s1638_s17   ;;  %s336_s29 = int_to_ptr.hbm [resolvable:$true] %s335_s29 }
  0x2b   : > { %1267 = dma.hbm_to_vmem [thread:$0]  (!%p1262_p1), %s336_s29, 16, %s338_s2, [#allocation10]  }
  0x2c   : > { %s1181_s3 = sshll.u32 %s1823_s23, 3  ;;  %s2284_s28 = smov (%p45_p4, %s44_s28), 0 }
  0x2d   : > { %2250 = sst [smem:[#allocation25_spill]] %s2284_s28  ;;  %s2286_s24 = smov (!%p45_p4, %s47_s24), %s1654_s20 }
  0x2e   : > { %s52_s25 = ssub.s32 %s1650_s8, %s2284_s28  ;;  %p49_p5 = scmp.ge.s32.totalorder %s2286_s24, 2 }
  0x2f   : > { %s1182_s11 = sshll.u32 %s1650_s8, 1  ;;  %s1183_s14 = sshll.u32 %s1654_s20, 3 }
  0x30   : > { %s367_s2 = scalar_lea.vmem [#allocation3], %s1181_s3  ;;  %s2288_s24 = smov (%p49_p5, %s2286_s24), 0 }
  0x31   : > { %s377_s29 = sshll.u32 %s367_s2, 4  ;;  %2251 = sst [smem:[#allocation26_spill]] %s2288_s24  ;;  %s378_s29 = int_to_ptr.vmem [resolvable:$true] %s377_s29 }
  0x32   : > { %s372_s13 = sadd.s32 %s1183_s14, %s1182_s11  ;;  %s51_s15 = ssub.s32 %s1654_s20, %s2288_s24 }
  0x33   : > { %s1184_s28 = sshll.u32 %s372_s13, 2  ;;  %s53_s10 = sor.u32 %s52_s25, %s51_s15 }
  0x34   : > { %s2252_s0 = sld [smem:[#allocation27_spill]]  ;;  %p54_p6 = scmp.eq.s32.totalorder %s53_s10, 0 }
  0x35   : > { %s2253_s2 = sadd.s32 1, %s1638_s17  ;;  %s364_s7 = scalar_lea.sflag [#allocation4], %s1823_s23 }
  0x36   : > { %s1843_s18 = scalar_select %p54_p6, %s1638_s17, %s2253_s2  }
  0x37   : > { %s1662_s6 = smov 64   ;;  %s1663_s11 = smov 4  }
  0x38   : > { %s387_s14 = sand.u32 1, %s1658_s21   ;;  %s1185_s24 = sshll.u32 %s1823_s23, 4 }
  0x39   : > { %s1234_s13 = sshll.u32 %s1650_s8, 2  ;;  %s1188_s15 = sshll.u32 %s1654_s20, 4 }
  0x3a   : > { %s374_s19 = scalar_lea.hbm %s2252_s0, %s1184_s28  ;;  %s391_s25 = scalar_lea.vmem [#allocation6], %s1185_s24 }
  0x3b   : > { %s375_s3 = sshll.u32 %s374_s19, 4  ;;  %s402_s5 = sshll.u32 %s391_s25, 4  ;;  %s376_s3 = int_to_ptr.hbm [resolvable:$true] %s375_s3  ;;  %s403_s5 = int_to_ptr.vmem [resolvable:$true] %s402_s5 }
  0x3c   : > { %1271 = dma.hbm_to_vmem [thread:$0]  (!%p1816_p2), %s376_s3, 128, %s378_s29, %s364_s7, %s1662_s6, %s1662_s6, %s1663_s11  }
  0x3d   : > { %s397_s9 = sadd.s32 %s1234_s13, %s1188_s15  ;;  %s388_s0 = scalar_lea.sflag [#allocation7], %s387_s14 }
  0x3e   : > { %s1189_s27 = sshll.u32 %s397_s9, 2  ;;  %414 = sbr.rel (%p1802_p12) target bundleno = 661 (0x295), region = 56 }
  0x3f   : > { %s399_s28 = scalar_lea.hbm %s2211_s1, %s1189_s27  ;;  %s1860_s7 = sand.u32 (!%p1802_p12), 1, %s1634_s16  }
  0x40   : > { %s400_s2 = sshll.u32 %s399_s28, 4  ;;  %s1191_s24 = sshll.u32 (!%p1802_p12), %s1860_s7, 3  ;;  %s401_s2 = int_to_ptr.hbm [resolvable:$true] %s400_s2 }
  0x41   : > { %1274 = dma.hbm_to_vmem [thread:$0]  (!%p1816_p2), %s401_s2, 256, %s403_s5, %s388_s0, %s1662_s6, %s1662_s6, %s1663_s11  }
  0x42   : > { %s417_s23 = scalar_lea.sflag (!%p1802_p12), [#allocation4], %s1860_s7  ;;  %s420_s29 = scalar_lea.vmem (!%p1802_p12), [#allocation3], %s1191_s24 }
  0x43   : > { %1605 = dma.done.wait (%p1785_p7), %s417_s23, 128  }
  0x44   : > { %1607 = vsyncadd (%p1785_p7), %s417_s23, 4294967168  ;;  %s426_s0 = sand.u32 1, %s1768_s22   ;;  %s1870_s5 = sshll.u32 %s1860_s7, 4 }
  0x45   : > { %s427_s6 = scalar_lea.sflag [#allocation7], %s426_s0  ;;  %s1873_s12 = scalar_lea.vmem [#allocation6], %s1870_s5 }
  0x46   : > { %1609 = dma.done.wait (%p1785_p7), %s427_s6, 256  }
  0x47   : > { %1611 = vsyncadd (%p1785_p7), %s427_s6, 4294967040 }
  0x48   : > { %1613 = dma.done.wait (%p70_p3), [#allocation7], 64  }
  0x49   : > { %1615 = vsyncadd (%p70_p3), [#allocation7], 4294967232 }
  0x4a   : > { %1617 = dma.done.wait (%p70_p3), [#allocation10], 16  }
  0x4b   : > { %1619 = vsyncadd (%p70_p3), [#allocation10], 4294967280  ;;  %vm509_vm0 = vcmask 1043456   ;;  %v495_v0 = vld [vmem:[#allocation8] sm:$0xf]  ;;  %v1235_v2 = vld [vmem:[%s420_s29] sm:$0xff] }
  0x4c   : > { %v511_v1 = vsel %vm509_vm0, %v495_v0, 0  ;;  %vm505_vm1 = vcmask 64512   ;;  %v1204_v3 = vld [vmem:[%s1873_s12] sm:$0xf]  ;;  %v1236_v4 = vld [vmem:[%s1873_s12 + $0x4] sm:$0xf0] }
  0x4d   : > { %520 = vmatpush.bf16.msra.mxu0 %v511_v1  ;;  %v1205_v5 = vor.u32 %v1236_v4, %v1204_v3  ;;  %s1664_s26 = smov 124   ;;  %v531_v6 = vld [vmem:[%s2214_s4] sm:$0x3]  ;;  %vm552_vm2 = vcmask 1041408   ;;  %s2254_s14 = sld [smem:[#allocation30_spill]]  ;;  %vm548_vm3 = vcmask 31744  }
  0x4e   : > { %v579_v7 = vsel %vm552_vm2, %v531_v6, 0  ;;  %v1361_v10 = vld [vmem:[#allocation9] ss:$0 sm:$0xff]  ;;  %vm540_vm4 = vcmask 60416   ;;  %v1237_v14 = vld [vmem:[%s1873_s12 + $0x8] sm:$0xf0] }
  0x4f   : > { %654 = vrot.lane.b32.xlu0 %v1205_v5, %s1664_s26  ;;  %588 = vmatpush.bf16.msra.mxu2 %v579_v7  ;;  %v1214_v13 = vld [vmem:[%s1873_s12 + $0x4] sm:$0xf]  ;;  %s1902_s13 = scalar_lea.vmem [#allocation11], %s1870_s5  ;;  %s1665_s15 = smov 116  }
  0x50   : > { %1201 = vmatmul.msk.bf16.vlgmr.msra.gmra.mxu0 %vm505_vm1, %v1235_v2  ;;  %v1215_v16 = vor.u32 %v1237_v14, %v1214_v13  ;;  %s1666_s25 = smov 120   ;;  %s2255_s10 = sld [smem:[#allocation31_spill]] }
  0x51   : > { %685 = vmatpush.bf16.msrb.mxu0 %v579_v7  ;;  %s2256_s2 = sld [smem:[#allocation32_spill]]  ;;  %s2046_s9 = scalar_lea.vmem [#allocation12], %s1870_s5 }
  0x52   : > { %s535_s24 = sld [smem:[#allocation2]] }
  0x53   : > { %800 = vmatpush.bf16.msrb.mxu2 %v579_v7  ;;  %v532_v8 = vld [vmem:[%s2254_s14] sm:$0x3]  ;;  %s2257_s23 = sld [smem:[#allocation21_spill]] }
  0x54   : > { %v554_v9 = vsel %vm552_vm2, %v532_v8, 0  ;;  %s2258_s29 = sld [smem:[#allocation22_spill]] }
  0x55   : > { %890 = vmatpush.bf16.msra.mxu0 %v579_v7  ;;  %563 = vmatpush.bf16.msra.mxu1 %v554_v9  ;;  %s2261_s11 = sld [smem:[#allocation33_spill]] }
  0x56   : > { %666 = vmatpush.bf16.msra.mxu3 %v554_v9  ;;  %v1362_v29 = vld [vmem:[%s2255_s10] ss:$0 sm:$0xff] }
  0x57   : > { %v1363_v33 = vld [vmem:[%s2256_s2] ss:$0 sm:$0xff] }
  0x58   : > { %1206 = vmatmul.msk.bf16.vlgmr.msra.gmra.mxu1 %vm548_vm3, %v1205_v5 }
  0x59   : > { %781 = vmatpush.bf16.msrb.mxu1 %v554_v9  ;;  %s1238_s0 = sshll.u32 %s2257_s23, 2 }
  0x5a   : > { %871 = vmatpush.bf16.msrb.mxu3 %v554_v9  ;;  %s1226_s6 = sshll.u32 %s2258_s29, 4 }
  0x68   : > { %1216 = vmatmul.msk.bf16.vlgmr.msrb.gmra.mxu1 %vm548_vm3, %v1215_v16 }
  0xc1   : > { %v655_v23 = vpop.permute.xlu0 %654 }
  0xc2   : > { %1208 = vmatmul.msk.bf16.vlgmr.msra.gmra.mxu3 %vm548_vm3, %v655_v23 }
  0xcd   : > { %v522_v11 = vpop.f32.mrf.mxu0 }
  0xce   : > { %v523_v12 = vadd.f32 %v1361_v10, %v522_v11 }
  0xd0   : > { %v1899_v15 = vpack.c.bf16 %v523_v12, %v523_v12 }
  0xd2   : > { %541 = vst.msk [vmem:[%s1902_s13] sm:$0xf] %vm540_vm4, %v1899_v15  ;;  %v572_v20 = vunpack.c.l.b16 %v1899_v15 }
  0xd5   : > { %v524_v17 = vpop.f32.mrf.mxu0  ;;  %v565_v27 = vpop.f32.mrf.mxu1 }
  0xd6   : > { %v525_v18 = vadd.f32 %v1361_v10, %v524_v17 }
  0xd8   : > { %v1908_v19 = vpack.c.bf16 %v525_v18, %v525_v18 }
  0xda   : > { %542 = vst.msk [vmem:[%s1902_s13 + $0x8] sm:$0xf] %vm540_vm4, %v1908_v19  ;;  %v573_v21 = vunpack.c.l.b16 %v1908_v19 }
  0xdc   : > { %v574_v22 = vpack.c.b16 %v573_v21, %v572_v20 }
  0xdd   : > { %v567_v35 = vpop.f32.mrf.mxu1 }
  0xde   : > { %878 = vrot.lane.b32.xlu2 %v574_v22, %s1665_s15  ;;  %788 = vrot.lane.b32.xlu1 %v574_v22, %s1666_s25  ;;  %s981_s15 = sshll.u32 %s1902_s13, 4  ;;  %s2035_s15 = int_to_ptr.vmem [resolvable:$true] %s981_s15 }
  0xdf   : > { %673 = vrot.lane.b32.xlu0 %v574_v22, %s1664_s26  ;;  %1207 = vmatmul.msk.bf16.vlgmr.msra.gmra.mxu2 %vm548_vm3, %v574_v22 }
  0xe5   : > { %v783_v48 = vpop.f32.mrf.mxu1 }
  0xe6   : > { %859 = vrot.lane.b32.xlu1 %v1215_v16, %s1664_s26  ;;  %s1996_s26 = sadd.s32 %s1238_s0, %s1226_s6 }
  0xe7   : > { %s1227_s30 = sshll.u32 %s1996_s26, 2 }
  0xe8   : > { %s980_s14 = scalar_lea.hbm %s2261_s11, %s1227_s30 }
  0xed   : > { %v785_v61 = vpop.f32.mrf.mxu1 }
 0x138   : > { %v879_v28 = vpop.permute.xlu2 %878 }
 0x145   : > { %v668_v44 = vpop.f32.mrf.mxu3 }
 0x14d   : > { %v670_v51 = vpop.f32.mrf.mxu3 }
 0x150   : > { %v789_v24 = vpop.permute.xlu1 %788 }
 0x151   : > { %v674_v25 = vpop.permute.xlu0 %673  ;;  %1217 = vmatmul.msk.bf16.vlgmr.msrb.gmra.mxu2 %vm548_vm3, %v789_v24  ;;  %v1942_v24 = vstv %s535_s24 }
 0x152   : > { %1209 = vmatmul.msk.bf16.vlgmr.msrb.gmra.mxu0 %vm548_vm3, %v674_v25 }
 0x158   : > { %v860_v26 = vpop.permute.xlu1 %859 }
 0x159   : > { %1218 = vmatmul.msk.bf16.vlgmr.msrb.gmra.mxu3 %vm548_vm3, %v860_v26 }
 0x162   : > { %v590_v30 = vpop.f32.mrf.mxu2  ;;  %1219 = vmatmul.msk.bf16.vlgmr.msra.gmra.mxu0 %vm548_vm3, %v879_v28 }
 0x163   : > { %v591_v31 = vadd.f32 %v590_v30, %v565_v27 }
 0x165   : > { %v598_v32 = vadd.f32 %v1362_v29, %v591_v31 }
 0x167   : > { %v600_v34 = vmax.f32 %v598_v32, 0.0 }
 0x169   : > { %v605_v36 = vmul.f32 %v1363_v33, %v600_v34 }
 0x16a   : > { %v592_v37 = vpop.f32.mrf.mxu2 }
 0x16b   : > { %v593_v38 = vadd.f32 %v592_v37, %v567_v35  ;;  %v607_v39 = vsel %vm548_vm3, %v605_v36, 0.0 }
 0x16c   : > { %608 = vadd.xlane.f32.xlu2 %v607_v39 }
 0x16d   : > { %v599_v40 = vadd.f32 %v1362_v29, %v593_v38 }
 0x16f   : > { %v601_v41 = vmax.f32 %v599_v40, 0.0 }
 0x171   : > { %v606_v42 = vmul.f32 %v1363_v33, %v601_v41 }
 0x173   : > { %v610_v43 = vsel %vm548_vm3, %v606_v42, 0.0 }
 0x174   : > { %611 = vadd.xlane.f32.xlu0 %v610_v43 }
 0x1cf   : > { %v687_v45 = vpop.f32.mrf.mxu0 }
 0x1d0   : > { %v688_v46 = vadd.f32 %v687_v45, %v668_v44 }
 0x1d2   : > { %v692_v47 = vadd.f32 %v1362_v29, %v688_v46 }
 0x1d4   : > { %v694_v49 = vmax.f32 %v692_v47, 0.0  ;;  %v802_v50 = vpop.f32.mrf.mxu2 }
 0x1d5   : > { %v803_v52 = vadd.f32 %v802_v50, %v783_v48 }
 0x1d6   : > { %v696_v53 = vmul.f32 %v1363_v33, %v694_v49 }
 0x1d7   : > { %v807_v54 = vadd.f32 %v1362_v29, %v803_v52  ;;  %v689_v55 = vpop.f32.mrf.mxu0 }
 0x1d8   : > { %v690_v56 = vadd.f32 %v689_v55, %v670_v51  ;;  %v698_v57 = vsel %vm548_vm3, %v696_v53, 0.0 }
 0x1d9   : > { %v809_v58 = vmax.f32 %v807_v54, 0.0  ;;  %699 = vadd.xlane.f32.xlu1 %v698_v57 }
 0x1da   : > { %v693_v59 = vadd.f32 %v1362_v29, %v690_v56 }
 0x1db   : > { %v811_v60 = vmul.f32 %v1363_v33, %v809_v58 }
 0x1dc   : > { %v804_v62 = vpop.f32.mrf.mxu2  ;;  %v695_v63 = vmax.f32 %v693_v59, 0.0  ;;  %v873_v1 = vpop.f32.mrf.mxu3 }
 0x1dd   : > { %v805_v0 = vadd.f32 %v804_v62, %v785_v61  ;;  %v813_v2 = vsel %vm548_vm3, %v811_v60, 0.0  ;;  %v536_v62 = vlaneseq }
 0x1de   : > { %814 = vadd.xlane.f32.xlu2 %v813_v2  ;;  %v697_v7 = vmul.f32 %v1363_v33, %v695_v63 }
 0x1df   : > { %v808_v3 = vadd.f32 %v1362_v29, %v805_v0  ;;  %v892_v4 = vpop.f32.mrf.mxu0  ;;  %v609_v25 = vpop.xlane.xlu2 %608 }
 0x1e0   : > { %v893_v5 = vadd.f32 %v892_v4, %v873_v1  ;;  %v701_v12 = vsel %vm548_vm3, %v697_v7, 0.0  ;;  %v614_v26 = vadd.f32 %v1942_v24, %v609_v25  ;;  %v1981_v7 = vld [vmem:[%s1873_s12] sm:$0xff]  }
 0x1e1   : > { %v810_v6 = vmax.f32 %v808_v3, 0.0 }
 0x1e2   : > { %v897_v8 = vadd.f32 %v1362_v29, %v893_v5  ;;  %v616_v27 = vsub.f32 0.0, %v614_v26  ;;  %v1975_v5 = vand.u32 127, %v536_v62 }
 0x1e3   : > { %v812_v9 = vmul.f32 %v1363_v33, %v810_v6 }
 0x1e4   : > { %v899_v10 = vmax.f32 %v897_v8, 0.0  ;;  %v875_v14 = vpop.f32.mrf.mxu3  ;;  %vm744_vm10 = vcmp.lt.s32.totalorder %v1975_v5, 4 }
 0x1e5   : > { %v816_v11 = vsel %vm548_vm3, %v812_v9, 0.0 }
 0x1e6   : > { %817 = vadd.xlane.f32.xlu0 %v816_v11  ;;  %702 = vadd.xlane.f32.xlu2 %v701_v12  ;;  %v901_v13 = vmul.f32 %v1363_v33, %v899_v10 }
 0x1e7   : > { %v894_v16 = vpop.f32.mrf.mxu0  ;;  %v612_v28 = vpop.xlane.xlu0 %611 }
 0x1e8   : > { %v895_v17 = vadd.f32 %v894_v16, %v875_v14  ;;  %v903_v18 = vsel %vm548_vm3, %v901_v13, 0.0  ;;  %v615_v30 = vadd.f32 %v1942_v24, %v612_v28 }
 0x1e9   : > { %904 = vadd.xlane.f32.xlu1 %v903_v18 }
 0x1ea   : > { %v898_v20 = vadd.f32 %v1362_v29, %v895_v17  ;;  %v618_v29 = vmul.f32 1.442695, %v616_v27  ;;  %v617_v31 = vsub.f32 0.0, %v615_v30 }
 0x1ec   : > { %v900_v21 = vmax.f32 %v898_v20, 0.0  ;;  %1364 = vpow2.f32 %v618_v29 }
 0x1ee   : > { %v902_v22 = vmul.f32 %v1363_v33, %v900_v21  ;;  %v620_v33 = vmul.f32 1.442695, %v617_v31 }
 0x1f0   : > { %v906_v23 = vsel %vm548_vm3, %v902_v22, 0.0  ;;  %1366 = vpow2.f32 %v620_v33 }
 0x1f1   : > { %907 = vadd.xlane.f32.xlu2 %v906_v23  ;;  %v749_v23 = vunpack.c.l.bf16 %v1981_v7 }
 0x1f2   : > { %v1365_v32 = vpop.eup %1364 }
 0x1f3   : > { %v1946_v34 = vadd.f32 1.0, %v1365_v32 }
 0x1f5   : > { %1368 = vrcp.f32 %v1946_v34  ;;  %vm629_vm6 = vweird.f32 %v1946_v34  ;;  %v633_v10 = vand.u32 2147483647, %v1946_v34  ;;  %v635_v11 = vand.u32 2147483648, %v1946_v34 }
 0x1f6   : > { %v1367_v38 = vpop.eup %1366 }
 0x1f7   : > { %v1953_v42 = vadd.f32 1.0, %v1367_v38  ;;  %v636_v29 = vor.u32 1.1754944e-38, %v635_v11  ;;  %vm634_vm12 = vcmp.eq.f32.partialorder %v633_v10, 8.507059e+37 }
 0x1f9   : > { %vm644_vm15 = vweird.f32 %v1953_v42 }
 0x1fa   : > { %757 = vrot.lane.b32.xlu0 %v1899_v15, %s1666_s25 }
 0x1fb   : > { %v1951_v41 = vpop.eup %1368 }
 0x1fc   : > { %v625_v44 = vmul.f32 %v1951_v41, %v1946_v34  ;;  %vm630_vm5 = vweird.f32 %v1951_v41 }
 0x1fd   : > { %vm1991_vm7 = vmor %vm629_vm6, %vm630_vm5 }
 0x1fe   : > { %v626_v51 = vsub.f32 1.0, %v625_v44 }
 0x200   : > { %v627_v61 = vmul.f32 %v1951_v41, %v626_v51 }
 0x202   : > { %759 = vrot.lane.b32.xlu1 %v1908_v19, %s1666_s25  ;;  %v628_v4 = vadd.f32 %v1951_v41, %v627_v61  ;;  %s983_s25 = sshll.u32 %s980_s14, 4  ;;  %s2056_s25 = int_to_ptr.hbm [resolvable:$true] %s983_s25 }
 0x203   : > { %s1530_s27 = sshra.s32 %s2056_s25, 4  ;;  %s1531_s27 = int_to_ptr.hbm [resolvable:$true] %s1530_s27 }
 0x204   : > { %v632_v22 = vsel %vm1991_vm7, %v1951_v41, %v628_v4  ;;  %v650_v41 = vand.u32 2147483648, %v1953_v42  ;;  %s1532_s10 = scalar_lea.hbm %s1531_s27, 16  ;;  %p1537_p11 = scmp.lt.s32.totalorder %s1531_s27, %s2261_s11 }
 0x205   : > { %v637_v34 = vsel %vm634_vm12, %v636_v29, %v632_v22  ;;  %p1533_p3 = scmp.ne.s32.totalorder %s1531_s27, %s1532_s10 }
 0x207   : > { %p1534_p7 = pnand %p1533_p3, %p1789_p8 }
 0x209   : > { %p1535_p10 = pneg %p1534_p7 }
 0x24c   : > { %v700_v15 = vpop.xlane.xlu1 %699 }
 0x24d   : > { %v704_v19 = vadd.f32 %v700_v15, %v1942_v24 }
 0x24f   : > { %v706_v35 = vsub.f32 0.0, %v704_v19 }
 0x251   : > { %v708_v36 = vmul.f32 1.442695, %v706_v35  ;;  %v815_v37 = vpop.xlane.xlu2 %814 }
 0x252   : > { %v819_v39 = vadd.f32 %v815_v37, %v1942_v24 }
 0x253   : > { %1370 = vpow2.f32 %v708_v36 }
 0x254   : > { %v821_v40 = vsub.f32 0.0, %v819_v39 }
 0x256   : > { %v823_v43 = vmul.f32 1.442695, %v821_v40 }
 0x258   : > { %1372 = vpow2.f32 %v823_v43  ;;  %v648_v43 = vand.u32 2147483647, %v1953_v42 }
 0x259   : > { %v1371_v45 = vpop.eup %1370  ;;  %1374 = vrcp.f32 %v1953_v42  ;;  %v818_v46 = vpop.xlane.xlu0 %817 }
 0x25a   : > { %v703_v47 = vpop.xlane.xlu2 %702  ;;  %v1958_v48 = vadd.f32 1.0, %v1371_v45  ;;  %v820_v49 = vadd.f32 %v818_v46, %v1942_v24  ;;  %vm649_vm1 = vcmp.eq.f32.partialorder %v648_v43, 8.507059e+37 }
 0x25b   : > { %v705_v50 = vadd.f32 %v703_v47, %v1942_v24 }
 0x25c   : > { %1376 = vrcp.f32 %v1958_v48  ;;  %v905_v52 = vpop.xlane.xlu1 %904  ;;  %v822_v53 = vsub.f32 0.0, %v820_v49  ;;  %v725_v13 = vand.u32 2147483648, %v1958_v48  ;;  %v723_v18 = vand.u32 2147483647, %v1958_v48 }
 0x25d   : > { %v707_v54 = vsub.f32 0.0, %v705_v50  ;;  %v909_v55 = vadd.f32 %v905_v52, %v1942_v24  ;;  %vm719_vm9 = vweird.f32 %v1958_v48  ;;  %v651_v49 = vor.u32 1.1754944e-38, %v650_v41  ;;  %v2054_v52 = vld [vmem:[%s1873_s12 + $0x8] sm:$0xff]   ;;  %s961_s12 = scalar_lea.sflag [#allocation5], %s1860_s7 }
 0x25e   : > { %v1373_v56 = vpop.eup %1372  ;;  %v825_v59 = vmul.f32 1.442695, %v822_v53  ;;  %v726_v31 = vor.u32 1.1754944e-38, %v725_v13  ;;  %vm724_vm13 = vcmp.eq.f32.partialorder %v723_v18, 8.507059e+37  ;;  %v1242_v62 = vunpack.c.l.bf16 %v2054_v52 }
 0x25f   : > { %v1964_v57 = vpop.eup %1374  ;;  %v1966_v58 = vadd.f32 1.0, %v1373_v56  ;;  %v911_v60 = vsub.f32 0.0, %v909_v55  ;;  %v710_v63 = vmul.f32 1.442695, %v707_v54 }
 0x260   : > { %v640_v1 = vmul.f32 %v1964_v57, %v1953_v42  ;;  %vm645_vm14 = vweird.f32 %v1964_v57 }
 0x261   : > { %1378 = vrcp.f32 %v1966_v58  ;;  %v913_v2 = vmul.f32 1.442695, %v911_v60  ;;  %vm2037_vm0 = vmor %vm644_vm15, %vm645_vm14  ;;  %v838_v50 = vand.u32 2147483647, %v1966_v58  ;;  %v840_v54 = vand.u32 2147483648, %v1966_v58 }
 0x262   : > { %v1377_v0 = vpop.eup %1376  ;;  %1380 = vpow2.f32 %v825_v59  ;;  %v641_v12 = vsub.f32 1.0, %v640_v1  ;;  %vm834_vm3 = vweird.f32 %v1966_v58 }
 0x263   : > { %v715_v3 = vmul.f32 %v1377_v0, %v1958_v48  ;;  %1382 = vpow2.f32 %v710_v63  ;;  %vm720_vm8 = vweird.f32 %v1377_v0 }
 0x264   : > { %v908_v6 = vpop.xlane.xlu2 %907  ;;  %1384 = vpow2.f32 %v913_v2  ;;  %v642_v30 = vmul.f32 %v1964_v57, %v641_v12  ;;  %vm721_vm11 = vmor %vm719_vm9, %vm720_vm8 }
 0x265   : > { %v716_v8 = vsub.f32 1.0, %v715_v3  ;;  %v910_v9 = vadd.f32 %v908_v6, %v1942_v24 }
 0x266   : > { %v643_v39 = vadd.f32 %v1964_v57, %v642_v30 }
 0x267   : > { %v1987_v14 = vpop.eup %1378  ;;  %v717_v17 = vmul.f32 %v1377_v0, %v716_v8  ;;  %v912_v20 = vsub.f32 0.0, %v910_v9 }
 0x268   : > { %v1381_v21 = vpop.eup %1380  ;;  %v830_v25 = vmul.f32 %v1987_v14, %v1966_v58  ;;  %v647_v48 = vsel %vm2037_vm0, %v1964_v57, %v643_v39  ;;  %vm835_vm2 = vweird.f32 %v1987_v14 }
 0x269   : > { %v718_v24 = vadd.f32 %v1377_v0, %v717_v17  ;;  %v2005_v26 = vadd.f32 1.0, %v1381_v21  ;;  %v915_v27 = vmul.f32 1.442695, %v912_v20  ;;  %v1383_v28 = vpop.eup %1382  ;;  %v2065_v59 = vsel %vm649_vm1, %v651_v49, %v647_v48 }
 0x26a   : > { %v1385_v32 = vpop.eup %1384  ;;  %v2012_v19 = vadd.f32 1.0, %v1383_v28  ;;  %v831_v37 = vsub.f32 1.0, %v830_v25 }
 0x26b   : > { %v722_v33 = vsel %vm721_vm11, %v1377_v0, %v718_v24  ;;  %1386 = vrcp.f32 %v2005_v26  ;;  %v2016_v38 = vadd.f32 1.0, %v1385_v32 }
 0x26c   : > { %v727_v15 = vsel %vm724_vm13, %v726_v31, %v722_v33  ;;  %v758_v35 = vpop.permute.xlu0 %757  ;;  %1388 = vpow2.f32 %v915_v27  ;;  %v832_v47 = vmul.f32 %v1987_v14, %v831_v37 }
 0x26d   : > { %v747_v36 = vsel %vm744_vm10, %v637_v34, %v727_v15  ;;  %1210 = vst.msk [vmem:[%s1902_s13 + $0x4] sm:$0xf] %vm540_vm4, %v758_v35  ;;  %1390 = vrcp.f32 %v2012_v19 }
 0x26e   : > { %v751_v40 = vmul.f32 %v749_v23, %v747_v36  ;;  %1392 = vrcp.f32 %v2016_v38  ;;  %v833_v60 = vadd.f32 %v1987_v14, %v832_v47 }
 0x270   : > { %v753_v44 = vpack.c.bf16 %v751_v40, %v751_v40 }
 0x271   : > { %v2033_v45 = vpop.eup %1386 }
 0x272   : > { %755 = vst.msk [vmem:[%s2046_s9] sm:$0xf] %vm540_vm4, %v753_v44  ;;  %v1389_v42 = vpop.eup %1388  ;;  %v845_v51 = vmul.f32 %v2033_v45, %v2005_v26 }
 0x273   : > { %v2058_v53 = vpop.eup %1390  ;;  %v2061_v55 = vadd.f32 1.0, %v1389_v42 }
 0x274   : > { %v760_v56 = vpop.permute.xlu1 %759  ;;  %v2063_v57 = vpop.eup %1392  ;;  %v730_v61 = vmul.f32 %v2058_v53, %v2012_v19 }
 0x275   : > { %1211 = vst.msk [vmem:[%s1902_s13 + $0xc] sm:$0xf] %vm540_vm4, %v760_v56  ;;  %v920_v63 = vmul.f32 %v2063_v57, %v2016_v38  ;;  %1394 = vrcp.f32 %v2061_v55  ;;  %s1536_s13 = scalar_lea.hbm %s2261_s11, 128 }
 0x276   : > { %p1538_p12 = scmp.lt.s32.totalorder %s1536_s13, %s1532_s10 }
 0x278   : > { %p1539_p13 = por %p1538_p12, %p1537_p11 }
 0x27a   : > { %p1540_p0 = pnand %p1539_p13, %p1535_p10 }
 0x27c   : > { %1543 = shalt.err (!%p1540_p0)
}
 0x27d   : > { %s1667_s23 = smov 64   ;;  %s1668_s29 = smov 4   ;;  %vm2095_vm5 = vcmp.eq.f32.partialorder %v838_v50, 8.507059e+37  ;;  %v846_v1 = vsub.f32 1.0, %v845_v51  ;;  %v731_v2 = vsub.f32 1.0, %v730_v61  ;;  %v951_v3 = vunpack.c.h.bf16 %v1981_v7  ;;  %vm2104_vm6 = vmor %vm834_vm3, %vm835_vm2  ;;  %v1395_v18 = vpop.eup %1394 }
 0x27e   : > { %1257 = dma.vmem_to_hbm [thread:$0]  (%p1789_p8), %s2035_s15, 256, %s2056_s25, %s961_s12, %s1667_s23, %s1667_s23, %s1668_s29   ;;  %v841_v6 = vor.u32 1.1754944e-38, %v840_v54  ;;  %v738_v8 = vand.u32 2147483647, %v2012_v19  ;;  %v740_v9 = vand.u32 2147483648, %v2012_v19  ;;  %v921_v10 = vsub.f32 1.0, %v920_v63 }
 0x27f   : > { %v837_v11 = vsel %vm2104_vm6, %v1987_v14, %v833_v60  ;;  %v732_v7 = vmul.f32 %v2058_v53, %v731_v2  ;;  %vm735_vm7 = vweird.f32 %v2058_v53  ;;  %v930_v58 = vand.u32 2147483648, %v2016_v38  ;;  %s2271_s3 = sld [smem:[#allocation34_spill]]  ;;  %s1001_s14 = sshll.u32 %s2046_s9, 4  ;;  %s1002_s14 = int_to_ptr.vmem [resolvable:$true] %s1001_s14 }
 0x280   : > { %vm849_vm8 = vweird.f32 %v2005_v26  ;;  %v922_v12 = vmul.f32 %v2063_v57, %v921_v10  ;;  %vm925_vm9 = vweird.f32 %v2063_v57  ;;  %v928_v13 = vand.u32 2147483647, %v2016_v38  ;;  %s966_s26 = scalar_lea.sflag [#allocation13], %s1860_s7 }
 0x281   : > { %v847_v16 = vmul.f32 %v2033_v45, %v846_v1  ;;  %v853_v17 = vand.u32 2147483647, %v2005_v26  ;;  %v733_v14 = vadd.f32 %v2058_v53, %v732_v7  ;;  %vm734_vm11 = vweird.f32 %v2012_v19 }
 0x282   : > { %v842_v20 = vsel %vm2095_vm5, %v841_v6, %v837_v11  ;;  %vm736_vm12 = vmor %vm734_vm11, %vm735_vm7  ;;  %v741_v21 = vor.u32 1.1754944e-38, %v740_v9  ;;  %v923_v22 = vadd.f32 %v2063_v57, %v922_v12  ;;  %vm924_vm13 = vweird.f32 %v2016_v38 }
 0x283   : > { %v737_v23 = vsel %vm736_vm12, %v2058_v53, %v733_v14  ;;  %vm739_vm14 = vcmp.eq.f32.partialorder %v738_v8, 8.507059e+37  ;;  %vm926_vm15 = vmor %vm924_vm13, %vm925_vm9  ;;  %v931_v24 = vor.u32 1.1754944e-38, %v930_v58  ;;  %v935_v25 = vmul.f32 %v1395_v18, %v2061_v55 }
 0x284   : > { %vm850_vm0 = vweird.f32 %v2033_v45  ;;  %v742_v27 = vsel %vm739_vm14, %v741_v21, %v737_v23  ;;  %v927_v28 = vsel %vm926_vm15, %v2063_v57, %v923_v22  ;;  %vm929_vm1 = vcmp.eq.f32.partialorder %v928_v13, 8.507059e+37 }
 0x285   : > { %v848_v29 = vadd.f32 %v2033_v45, %v847_v16  ;;  %v748_v30 = vsel %vm744_vm10, %v2065_v59, %v742_v27  ;;  %v932_v31 = vsel %vm929_vm1, %v931_v24, %v927_v28  ;;  %v936_v32 = vsub.f32 1.0, %v935_v25  ;;  %vm2145_vm3 = vmor %vm849_vm8, %vm850_vm0  ;;  %s1000_s22 = scalar_lea.hbm %s2271_s3, %s1227_s30  ;;  %s1564_s10 = scalar_lea.hbm %s2271_s3, 128 }
 0x286   : > { %v855_v33 = vand.u32 2147483648, %v2005_v26  ;;  %v752_v34 = vmul.f32 %v1242_v62, %v748_v30  ;;  %v949_v15 = vsel %vm744_vm10, %v842_v20, %v932_v31  ;;  %v945_v19 = vand.u32 2147483648, %v2061_v55  ;;  %s1003_s15 = sshll.u32 %s1000_s22, 4  ;;  %s1004_s15 = int_to_ptr.hbm [resolvable:$true] %s1003_s15 }
 0x287   : > { %v953_v35 = vmul.f32 %v951_v3, %v949_v15  ;;  %v937_v36 = vmul.f32 %v1395_v18, %v936_v32  ;;  %vm940_vm2 = vweird.f32 %v1395_v18  ;;  %v943_v37 = vand.u32 2147483647, %v2061_v55  ;;  %s1558_s30 = sshra.s32 %s1004_s15, 4  ;;  %s1559_s30 = int_to_ptr.hbm [resolvable:$true] %s1558_s30 }
 0x288   : > { %v754_v39 = vpack.c.bf16 %v752_v34, %v752_v34  ;;  %v852_v40 = vsel %vm2145_vm3, %v2033_v45, %v848_v29  ;;  %vm939_vm5 = vweird.f32 %v2061_v55  ;;  %v856_v44 = vor.u32 1.1754944e-38, %v855_v33  ;;  %s1560_s25 = scalar_lea.hbm %s1559_s30, 16  ;;  %p1565_p5 = scmp.lt.s32.totalorder %s1559_s30, %s2271_s3 }
 0x289   : > { %v955_v41 = vpack.c.bf16 %v953_v35, %v953_v35  ;;  %v938_v43 = vadd.f32 %v1395_v18, %v937_v36  ;;  %v1243_v46 = vunpack.c.h.bf16 %v2054_v52  ;;  %vm941_vm6 = vmor %vm939_vm5, %vm940_vm2  ;;  %v946_v26 = vor.u32 1.1754944e-38, %v945_v19  ;;  %p1561_p1 = scmp.ne.s32.totalorder %s1559_s30, %s1560_s25  ;;  %p1566_p6 = scmp.lt.s32.totalorder %s1564_s10, %s1560_s25 }
 0x28a   : > { %756 = vst.msk [vmem:[%s2046_s9 + $0x8] sm:$0xf] %vm540_vm4, %v754_v39  ;;  %vm854_vm7 = vcmp.eq.f32.partialorder %v853_v17, 8.507059e+37  ;;  %vm944_vm8 = vcmp.eq.f32.partialorder %v943_v37, 8.507059e+37 }
 0x28b   : > { %v942_v45 = vsel %vm941_vm6, %v1395_v18, %v938_v43  ;;  %1220 = vst.msk [vmem:[%s2046_s9 + $0x4] sm:$0xf] %vm540_vm4, %v955_v41  ;;  %v857_v47 = vsel %vm854_vm7, %v856_v44, %v852_v40  ;;  %p1562_p2 = pnand %p1561_p1, %p1789_p8  ;;  %p1567_p3 = por %p1566_p6, %p1565_p5 }
 0x28c   : > { %v947_v48 = vsel %vm944_vm8, %v946_v26, %v942_v45 }
 0x28d   : > { %v950_v42 = vsel %vm744_vm10, %v857_v47, %v947_v48  ;;  %p1563_p4 = pneg %p1562_p2 }
 0x28e   : > { %v954_v49 = vmul.f32 %v1243_v46, %v950_v42 }
 0x28f   : > { %p1568_p7 = pnand %p1567_p3, %p1563_p4 }
 0x290   : > { %v956_v50 = vpack.c.bf16 %v954_v49, %v954_v49 }
 0x292   : > { %1221 = vst.msk [vmem:[%s2046_s9 + $0xc] sm:$0xf] %vm540_vm4, %v956_v50 }
 0x293   : > { %1571 = shalt.err (!%p1568_p7)
}
 0x294   : > { %1258 = dma.vmem_to_hbm [thread:$0]  (%p1789_p8), %s1002_s14, 256, %s1004_s15, %s966_s26, %s1667_s23, %s1667_s23, %s1668_s29  }
 0x295 PF: > { %s2272_s7 = sld [smem:[#allocation20_spill]]  ;;  %p1287_p10 = scmp.ge.s32.totalorder %s1658_s21, 2 }
 0x297   : > { %p1276_p11 = pnand %p1287_p10, %p1793_p9 }
 0x299   : > { %p1277_p12 = pneg %p1276_p11 }
 0x29b   : > { %s1018_s13 = sand.u32 1, %s2272_s7  }
 0x29c   : > { %s1019_s2 = scalar_lea.sflag [#allocation5], %s1018_s13 }
 0x29d   : > { %1621 = dma.done.wait (%p1277_p12), %s1019_s2, 256  }
 0x29e   : > { %1623 = vsyncadd (%p1277_p12), %s1019_s2, 4294967040  ;;  %s1029_s24 = scalar_lea.sflag [#allocation13], %s1018_s13 }
 0x29f   : > { %1625 = dma.done.wait (%p1277_p12), %s1029_s24, 256  }
 0x2a0   : > { %1627 = vsyncadd (%p1277_p12), %s1029_s24, 4294967040  ;;  %s35_s21 = sadd.s32 1, %s1658_s21   ;;  %s2274_s5 = sld [smem:[#allocation25_spill]] }
 0x2a1   : > { %p32_p13 = scmp.ge.s32.totalorder %s35_s21, 10   ;;  %s2275_s23 = sld [smem:[#allocation26_spill]] }
 0x2a2   : > { %s2276_s15 = smov %s1634_s16  ;;  %s2277_s16 = smov %s1638_s17 }
 0x2a3   : > { %s2278_s17 = smov %s1843_s18  ;;  %s2279_s18 = smov %s1650_s8 }
 0x2a4   : > { %s2280_s19 = smov %s1654_s20  ;;  %34 = sbr.rel (!%p32_p13) target bundleno = 22 (0x16), region = 141 }
 0x2a6   : > { %s2281_s8 = smov %s2274_s5 }
 0x2a7   : > { %s2282_s20 = smov %s2275_s23 }
 0x2a9   :  { %1035 = vsyncpa [#allocation4], 1 }
 0x2aa   :  { %1037 = vsyncpa [#allocation4 + $0x1], 1 }
 0x2ab   :  { %1038 = vsyncpa [#allocation7], 1 }
 0x2ac   :  { %1040 = vsyncpa [#allocation7 + $0x1], 1 }
 0x2ad   :  { %1041 = vsyncpa [#allocation10], 1 }
 0x2ae   :  { %1042 = vsyncpa [#allocation5], 1 }
 0x2af   :  { %1044 = vsyncpa [#allocation5 + $0x1], 1 }
 0x2b0   :  { %1045 = vsyncpa [#allocation13], 1 }
 0x2b1   :  { %1047 = vsyncpa [#allocation13 + $0x1], 1 }

</bundles_post_ra>
